<compile_context>
chip_gen: v6e
topology: v6e:2x2x1
jax: 0.10.0
libtpu: 0.0.40
codegen_flags: <defaults>
</compile_context>

<pallas_src>
import jax
import jax.numpy as jnp
from jax.experimental import pallas as pl
from jax.experimental.pallas import tpu as pltpu


def _round_up(x, m):
    return -(-x // m) * m


def _vmem_limit_bytes():
    """Generation-aware scoped-VMEM limit (conservative; safe on v7x's 64 MiB)."""
    try:
        cap = int(pltpu.get_tpu_info().vmem_capacity_bytes)
    except Exception:
        cap = 64 * 1024 * 1024
    return max(16 * 1024 * 1024, min(cap * 3 // 4, 96 * 1024 * 1024))


def _plan_tiles(H, W, Ci, Co, Cop, itemsize, vmem_limit):
    """Pick (pass-1 row tile, pass-2 row tile, Cop tile) under the VMEM budget."""
    kdim = 3 * Ci
    kdim_pad = _round_up(kdim, 128)
    w_pad = _round_up(W, 8)

    # Output-channel tile: resident (double-buffered) folded weights <= 1/4 VMEM.
    w_budget = vmem_limit // 4
    q = Cop // 128
    copt = 128
    for d in range(q, 0, -1):
        if q % d == 0 and 2 * 3 * kdim * d * 128 * itemsize <= w_budget:
            copt = d * 128
            break

    # Pass-1 row tile: double-buffered input + output blocks under ~60% of VMEM.
    budget = max(vmem_limit * 6 // 10, 2 * 1024 * 1024)
    per_row1 = w_pad * (2 * kdim_pad * itemsize + 2 * copt * 4)
    th = max(1, min(H, budget // per_row1 - 2, 512))

    # Pass-2 row tile: largest divisor of th whose blocks fit the same budget.
    per_row2 = 2 * w_pad * Cop * 4 + 4 * w_pad * _round_up(2 * Co, 128) * 4
    th2 = 1
    for d in range(th, 0, -1):
        if th % d == 0 and d * per_row2 <= budget:
            th2 = d
            break
    return th, th2, copt


def up_conv_forward(x_nchw, weight, bias, gamma, beta, eps=1e-5,
                    compute_dtype=jnp.float32):
    """Forward of up_conv: Upsample(x2 nearest) -> Conv3x3(pad=1) -> BN(train) -> ReLU.

    x_nchw: (N, Ci, H, W); weight: (Co, Ci, 3, 3) OIHW; bias/gamma/beta: (Co,).
    Returns (N, Co, 2H, 2W).
    """
    del bias  # exactly cancelled by train-mode BN mean subtraction
    N, Ci, H, W = map(int, x_nchw.shape)
    Co = int(weight.shape[0])
    Co4 = 4 * Co                        # 4 output subpixels per input pixel
    Co2 = 2 * Co
    Cop = _round_up(Co4, 128)           # lane-dense channels for the conv pass
    itemsize = jnp.dtype(compute_dtype).itemsize

    vmem_limit = _vmem_limit_bytes()
    TH, TH2, COPT = _plan_tiles(H, W, Ci, Co, Cop, itemsize, vmem_limit)
    Hp = _round_up(H, TH)
    nt = Hp // TH
    n_ct = Cop // COPT
    need_mask = Hp != H                 # padded rows must not pollute BN stats

    # ---- fold Upsample(x2, nearest) into the 3x3 conv weights -----------------
    # out[n, 2i+a, 2j+b, co] = sum_{u,v,ci} xpad[n, i+u, j+v, ci] * Wf[u,v,ci,a,b,co]
    f32w = weight.astype(jnp.float32)
    F = jnp.array([[[1, 0, 0], [0, 1, 1], [0, 0, 0]],     # subpixel index 0
                   [[0, 0, 0], [1, 1, 0], [0, 0, 1]]],    # subpixel index 1
                  dtype=jnp.float32)
    wf = jnp.einsum("aud,bve,oide->uviabo", F, F, f32w)   # (3, 3, Ci, 2, 2, Co)
    wf = wf.reshape(3, 3, Ci, Co4)
    wf = jnp.pad(wf, ((0, 0), (0, 0), (0, 0), (0, Cop - Co4)))
    wk = wf.reshape(3, 3 * Ci, Cop).astype(compute_dtype)  # horizontal taps -> K

    # ---- input: NHWC + pad + row-tile halo gather + W-only im2col -------------
    # (one fused XLA copy; the 4x upsampled tensor is never materialized)
    x_nhwc = jnp.transpose(x_nchw, (0, 2, 3, 1)).astype(compute_dtype)
    xp = jnp.pad(x_nhwc, ((0, 0), (1, 1 + Hp - H), (1, 1), (0, 0)))  # (N,Hp+2,W+2,Ci)
    row_idx = jnp.arange(nt)[:, None] * TH + jnp.arange(TH + 2)[None, :]
    xh = xp[:, row_idx]                                    # (N, nt, TH+2, W+2, Ci)
    xim = jnp.concatenate([xh[..., dw:dw + W, :] for dw in range(3)],
                          axis=-1)                         # (N, nt, TH+2, W, 3*Ci)

    # ---- pass 1: folded conv (3 big matmuls per tile) + BN partial sums -------
    def conv_stats_kernel(x_ref, w_ref, y_ref, stats_ref):
        th, w_px, copt = y_ref.shape
        m = th * w_px
        kdim = x_ref.shape[-1]
        for dh in range(3):                                # vertical taps, unrolled
            lhs = x_ref[dh:dh + th].reshape(m, kdim)
            part = jnp.dot(lhs, w_ref[dh],
                           preferred_element_type=jnp.float32)
            part = part.reshape(th, w_px, copt)
            if dh == 0:
                y_ref[...] = part                          # init, no zero pass
            else:
                y_ref[...] = y_ref[...] + part
        y = y_ref[...]
        if need_mask:                                      # rows >= H are padding
            rows = (pl.program_id(2) * th
                    + jax.lax.broadcasted_iota(jnp.int32, (th, 1, 1), 0))
            y = jnp.where(rows < H, y, 0.0)
        yf = y.reshape(m, copt)
        stats_ref[0:1, :] = jnp.sum(yf, axis=0, keepdims=True)
        stats_ref[1:2, :] = jnp.sum(yf * yf, axis=0, keepdims=True)

    y, stats = pl.pallas_call(
        conv_stats_kernel,
        out_shape=(jax.ShapeDtypeStruct((N, Hp, W, Cop), jnp.float32),
                   jax.ShapeDtypeStruct((N, nt, 2, Cop), jnp.float32)),
        grid=(n_ct, N, nt),
        in_specs=[
            pl.BlockSpec((None, None, TH + 2, W, 3 * Ci),
                         lambda c, n, t: (n, t, 0, 0, 0)),
            pl.BlockSpec((3, 3 * Ci, COPT),                # resident per Cop tile
                         lambda c, n, t: (0, 0, c)),
        ],
        out_specs=(
            pl.BlockSpec((None, TH, W, COPT), lambda c, n, t: (n, t, 0, c)),
            pl.BlockSpec((None, None, 2, COPT), lambda c, n, t: (n, t, 0, c)),
        ),
        compiler_params=pltpu.CompilerParams(
            dimension_semantics=("parallel", "parallel", "parallel"),
            vmem_limit_bytes=vmem_limit),
    )(xim, wk)

    # ---- BN statistics over (N, 2H, 2W): combine the 4 subpixel groups --------
    # (padded rows contribute exactly zero: zero inputs, no conv bias, plus the
    #  in-kernel row mask for the halo-adjacent padded row)
    s = jnp.sum(stats, axis=(0, 1))[:, :Co4].reshape(2, 4, Co).sum(axis=1)  # (2, Co)
    count = jnp.float32(N * (2 * H) * (2 * W))
    mean = s[0] / count
    var = s[1] / count - mean * mean               # biased variance (train mode)
    # TODO(synk): sum/sumsq can cancel for large conv-output means; switch to a
    # shifted/two-pass accumulation if that regime shows up with real weights.
    scale = gamma * jax.lax.rsqrt(var + eps)
    shift = beta - mean * scale
    scale4 = jnp.pad(jnp.tile(scale, 4), (0, Cop - Co4)).reshape(1, Cop)
    shift4 = jnp.pad(jnp.tile(shift, 4), (0, Cop - Co4)).reshape(1, Cop)

    # ---- pass 2: BN + ReLU + depth-to-space, unpadded output channels ---------
    def bn_relu_d2s_kernel(y_ref, scale_ref, shift_ref, o_ref):
        z = jnp.maximum(y_ref[...] * scale_ref[...] + shift_ref[...], 0.0)
        z0 = z[:, :, 0:Co2]                 # subpixel row a = 0  (channels (b, co))
        z1 = z[:, :, Co2:2 * Co2]           # subpixel row a = 1
        o_ref[:, 0:1, :, :] = z0[:, None, :, :].astype(o_ref.dtype)
        o_ref[:, 1:2, :, :] = z1[:, None, :, :].astype(o_ref.dtype)

    out5 = pl.pallas_call(
        bn_relu_d2s_kernel,
        out_shape=jax.ShapeDtypeStruct((N, Hp, 2, W, Co2), jnp.float32),
        grid=(N, Hp // TH2),
        in_specs=[
            pl.BlockSpec((None, TH2, W, Cop), lambda n, t: (n, t, 0, 0)),
            pl.BlockSpec((1, Cop), lambda n, t: (0, 0)),
            pl.BlockSpec((1, Cop), lambda n, t: (0, 0)),
        ],
        out_specs=pl.BlockSpec((None, TH2, 2, W, Co2),
                               lambda n, t: (n, t, 0, 0, 0)),
        compiler_params=pltpu.CompilerParams(
            dimension_semantics=("parallel", "parallel"),
            vmem_limit_bytes=vmem_limit),
    )(y, scale4, shift4)

    # ---- free reshape to (N, 2H, 2W, Co), then one NCHW transpose -------------
    # TODO(synk): keep NHWC (or emit NCHW blocks in pass 2) if downstream allows.
    out = out5.reshape(N, 2 * Hp, 2 * W, Co)
    if Hp != H:
        out = out[:, :2 * H]
    return jnp.transpose(out, (0, 3, 1, 2))


def _reference_forward(x, weight, bias, gamma, beta, eps=1e-5):
    """Pure-JAX reference matching the PyTorch module (train-mode BN)."""
    xu = jnp.repeat(jnp.repeat(x, 2, axis=2), 2, axis=3)
    conv = jax.lax.conv_general_dilated(
        xu, weight, window_strides=(1, 1), padding=((1, 1), (1, 1)),
        dimension_numbers=("NCHW", "OIHW", "NCHW"),
    ) + bias[None, :, None, None]
    mean = jnp.mean(conv, axis=(0, 2, 3), keepdims=True)
    var = jnp.mean(jnp.square(conv - mean), axis=(0, 2, 3), keepdims=True)
    yn = ((conv - mean) * jax.lax.rsqrt(var + eps)
          * gamma[None, :, None, None] + beta[None, :, None, None])
    return jnp.maximum(yn, 0.0)


if __name__ == "__main__":
    key = jax.random.PRNGKey(0)
    k_x, k_w, k_b, k_g, k_beta = jax.random.split(key, 5)

    N, Ci, H, W = 2, 4, 16, 16
    Co = 8

    x = jax.random.normal(k_x, (N, Ci, H, W), dtype=jnp.float32)
    weight = jax.random.normal(k_w, (Co, Ci, 3, 3), dtype=jnp.float32) * 0.1
    bias = jax.random.normal(k_b, (Co,), dtype=jnp.float32) * 0.1
    gamma = 1.0 + 0.1 * jax.random.normal(k_g, (Co,), dtype=jnp.float32)
    beta = 0.1 * jax.random.normal(k_beta, (Co,), dtype=jnp.float32)

    fwd = jax.jit(up_conv_forward)
    out = jax.block_until_ready(fwd(x, weight, bias, gamma, beta))

    ref = jax.block_until_ready(_reference_forward(x, weight, bias, gamma, beta))
    assert out.shape == (N, Co, 2 * H, 2 * W), out.shape
    max_err = float(jnp.max(jnp.abs(out - ref)))
    assert jnp.allclose(out, ref, atol=1e-4, rtol=1e-4), max_err

    print("KERNEL_OK")
</pallas_src>

<mosaic_0001>
module attributes {stable_mosaic.version = 11 : i64} {
  func.func @conv_stats_kernel(%arg0: i32, %arg1: i32, %arg2: i32, %arg3: memref<1x1x18x16x12xf32, #tpu.memory_space<vmem>>, %arg4: memref<3x12x128xf32, #tpu.memory_space<vmem>>, %arg5: memref<1x16x16x128xf32, #tpu.memory_space<vmem>>, %arg6: memref<1x1x2x128xf32, #tpu.memory_space<vmem>>) attributes {dimension_semantics = [#tpu.dimension_semantics<parallel>, #tpu.dimension_semantics<parallel>, #tpu.dimension_semantics<parallel>], iteration_bounds = array<i64: 1, 2, 1>, scalar_prefetch = 0 : i64, scratch_operands = 0 : i64, tpu.core_type = #tpu.core_type<tc>, window_params = [{transform_indices = @transform_0, window_bounds = array<i64: 1, 1, 18, 16, 12>}, {transform_indices = @transform_1, window_bounds = array<i64: 3, 12, 128>}, {transform_indices = @transform_2, window_bounds = array<i64: 1, 16, 16, 128>}, {transform_indices = @transform_3, window_bounds = array<i64: 1, 1, 2, 128>}]} {
    %c0 = arith.constant 0 : index
    %c0_0 = arith.constant 0 : index
    %c0_1 = arith.constant 0 : index
    %c0_2 = arith.constant 0 : index
    %c0_3 = arith.constant 0 : index
    %0 = vector.load %arg3[%c0, %c0_0, %c0_1, %c0_2, %c0_3] : memref<1x1x18x16x12xf32, #tpu.memory_space<vmem>>, vector<1x1x16x16x12xf32>
    %1 = vector.shape_cast %0 : vector<1x1x16x16x12xf32> to vector<16x16x12xf32>
    %2 = vector.shape_cast %1 : vector<16x16x12xf32> to vector<256x12xf32>
    %c0_4 = arith.constant 0 : index
    %c0_5 = arith.constant 0 : index
    %c0_6 = arith.constant 0 : index
    %3 = vector.load %arg4[%c0_4, %c0_5, %c0_6] : memref<3x12x128xf32, #tpu.memory_space<vmem>>, vector<1x12x128xf32>
    %4 = vector.shape_cast %3 : vector<1x12x128xf32> to vector<12x128xf32>
    %cst = arith.constant dense<0.000000e+00> : vector<256x128xf32>
    %5 = tpu.matmul %2, %4, %cst {dimension_numbers = #tpu.dot_dimension_numbers<[1], [0], [0], [1], [0, 0, 1, 1], [], []>} : vector<256x12xf32>, vector<12x128xf32>, vector<256x128xf32> -> vector<256x128xf32>
    %6 = vector.shape_cast %5 : vector<256x128xf32> to vector<16x16x128xf32>
    %c0_7 = arith.constant 0 : index
    %c0_8 = arith.constant 0 : index
    %c0_9 = arith.constant 0 : index
    %c0_10 = arith.constant 0 : index
    %7 = vector.load %arg5[%c0_7, %c0_8, %c0_9, %c0_10] : memref<1x16x16x128xf32, #tpu.memory_space<vmem>>, vector<1x16x16x128xf32>
    %8 = vector.shape_cast %7 : vector<1x16x16x128xf32> to vector<16x16x128xf32>
    %9 = vector.shape_cast %6 : vector<16x16x128xf32> to vector<1x16x16x128xf32>
    tpu.vector_store %arg5[%c0_7, %c0_8, %c0_9, %c0_10], %9 {strides = array<i32>} : memref<1x16x16x128xf32, #tpu.memory_space<vmem>>, vector<1x16x16x128xf32>,
    %c0_11 = arith.constant 0 : index
    %c0_12 = arith.constant 0 : index
    %c1 = arith.constant 1 : index
    %c0_13 = arith.constant 0 : index
    %c0_14 = arith.constant 0 : index
    %10 = vector.load %arg3[%c0_11, %c0_12, %c1, %c0_13, %c0_14] : memref<1x1x18x16x12xf32, #tpu.memory_space<vmem>>, vector<1x1x16x16x12xf32>
    %11 = vector.shape_cast %10 : vector<1x1x16x16x12xf32> to vector<16x16x12xf32>
    %12 = vector.shape_cast %11 : vector<16x16x12xf32> to vector<256x12xf32>
    %c1_15 = arith.constant 1 : index
    %c0_16 = arith.constant 0 : index
    %c0_17 = arith.constant 0 : index
    %13 = vector.load %arg4[%c1_15, %c0_16, %c0_17] : memref<3x12x128xf32, #tpu.memory_space<vmem>>, vector<1x12x128xf32>
    %14 = vector.shape_cast %13 : vector<1x12x128xf32> to vector<12x128xf32>
    %cst_18 = arith.constant dense<0.000000e+00> : vector<256x128xf32>
    %15 = tpu.matmul %12, %14, %cst_18 {dimension_numbers = #tpu.dot_dimension_numbers<[1], [0], [0], [1], [0, 0, 1, 1], [], []>} : vector<256x12xf32>, vector<12x128xf32>, vector<256x128xf32> -> vector<256x128xf32>
    %16 = vector.shape_cast %15 : vector<256x128xf32> to vector<16x16x128xf32>
    %c0_19 = arith.constant 0 : index
    %c0_20 = arith.constant 0 : index
    %c0_21 = arith.constant 0 : index
    %c0_22 = arith.constant 0 : index
    %17 = vector.load %arg5[%c0_19, %c0_20, %c0_21, %c0_22] : memref<1x16x16x128xf32, #tpu.memory_space<vmem>>, vector<1x16x16x128xf32>
    %18 = vector.shape_cast %17 : vector<1x16x16x128xf32> to vector<16x16x128xf32>
    %19 = arith.addf %18, %16 : vector<16x16x128xf32>
    %c0_23 = arith.constant 0 : index
    %c0_24 = arith.constant 0 : index
    %c0_25 = arith.constant 0 : index
    %c0_26 = arith.constant 0 : index
    %20 = vector.load %arg5[%c0_23, %c0_24, %c0_25, %c0_26] : memref<1x16x16x128xf32, #tpu.memory_space<vmem>>, vector<1x16x16x128xf32>
    %21 = vector.shape_cast %20 : vector<1x16x16x128xf32> to vector<16x16x128xf32>
    %22 = vector.shape_cast %19 : vector<16x16x128xf32> to vector<1x16x16x128xf32>
    tpu.vector_store %arg5[%c0_23, %c0_24, %c0_25, %c0_26], %22 {strides = array<i32>} : memref<1x16x16x128xf32, #tpu.memory_space<vmem>>, vector<1x16x16x128xf32>,
    %c0_27 = arith.constant 0 : index
    %c0_28 = arith.constant 0 : index
    %c2 = arith.constant 2 : index
    %c0_29 = arith.constant 0 : index
    %c0_30 = arith.constant 0 : index
    %23 = vector.load %arg3[%c0_27, %c0_28, %c2, %c0_29, %c0_30] : memref<1x1x18x16x12xf32, #tpu.memory_space<vmem>>, vector<1x1x16x16x12xf32>
    %24 = vector.shape_cast %23 : vector<1x1x16x16x12xf32> to vector<16x16x12xf32>
    %25 = vector.shape_cast %24 : vector<16x16x12xf32> to vector<256x12xf32>
    %c2_31 = arith.constant 2 : index
    %c0_32 = arith.constant 0 : index
    %c0_33 = arith.constant 0 : index
    %26 = vector.load %arg4[%c2_31, %c0_32, %c0_33] : memref<3x12x128xf32, #tpu.memory_space<vmem>>, vector<1x12x128xf32>
    %27 = vector.shape_cast %26 : vector<1x12x128xf32> to vector<12x128xf32>
    %cst_34 = arith.constant dense<0.000000e+00> : vector<256x128xf32>
    %28 = tpu.matmul %25, %27, %cst_34 {dimension_numbers = #tpu.dot_dimension_numbers<[1], [0], [0], [1], [0, 0, 1, 1], [], []>} : vector<256x12xf32>, vector<12x128xf32>, vector<256x128xf32> -> vector<256x128xf32>
    %29 = vector.shape_cast %28 : vector<256x128xf32> to vector<16x16x128xf32>
    %c0_35 = arith.constant 0 : index
    %c0_36 = arith.constant 0 : index
    %c0_37 = arith.constant 0 : index
    %c0_38 = arith.constant 0 : index
    %30 = vector.load %arg5[%c0_35, %c0_36, %c0_37, %c0_38] : memref<1x16x16x128xf32, #tpu.memory_space<vmem>>, vector<1x16x16x128xf32>
    %31 = vector.shape_cast %30 : vector<1x16x16x128xf32> to vector<16x16x128xf32>
    %32 = arith.addf %31, %29 : vector<16x16x128xf32>
    %c0_39 = arith.constant 0 : index
    %c0_40 = arith.constant 0 : index
    %c0_41 = arith.constant 0 : index
    %c0_42 = arith.constant 0 : index
    %33 = vector.load %arg5[%c0_39, %c0_40, %c0_41, %c0_42] : memref<1x16x16x128xf32, #tpu.memory_space<vmem>>, vector<1x16x16x128xf32>
    %34 = vector.shape_cast %33 : vector<1x16x16x128xf32> to vector<16x16x128xf32>
    %35 = vector.shape_cast %32 : vector<16x16x128xf32> to vector<1x16x16x128xf32>
    tpu.vector_store %arg5[%c0_39, %c0_40, %c0_41, %c0_42], %35 {strides = array<i32>} : memref<1x16x16x128xf32, #tpu.memory_space<vmem>>, vector<1x16x16x128xf32>,
    %c0_43 = arith.constant 0 : index
    %c0_44 = arith.constant 0 : index
    %c0_45 = arith.constant 0 : index
    %c0_46 = arith.constant 0 : index
    %36 = vector.load %arg5[%c0_43, %c0_44, %c0_45, %c0_46] : memref<1x16x16x128xf32, #tpu.memory_space<vmem>>, vector<1x16x16x128xf32>
    %37 = vector.shape_cast %36 : vector<1x16x16x128xf32> to vector<16x16x128xf32>
    %38 = vector.shape_cast %37 : vector<16x16x128xf32> to vector<256x128xf32>
    %cst_47 = arith.constant dense<0.000000e+00> : vector<128xf32>
    %39 = vector.multi_reduction <add>, %38, %cst_47 [0] : vector<256x128xf32> to vector<128xf32>
    %40 = vector.shape_cast %39 : vector<128xf32> to vector<1x128xf32>
    %c0_48 = arith.constant 0 : index
    %c0_49 = arith.constant 0 : index
    %c0_50 = arith.constant 0 : index
    %c0_51 = arith.constant 0 : index
    %41 = vector.load %arg6[%c0_48, %c0_49, %c0_50, %c0_51] : memref<1x1x2x128xf32, #tpu.memory_space<vmem>>, vector<1x1x1x128xf32>
    %42 = vector.shape_cast %41 : vector<1x1x1x128xf32> to vector<1x128xf32>
    %43 = vector.shape_cast %40 : vector<1x128xf32> to vector<1x1x1x128xf32>
    tpu.vector_store %arg6[%c0_48, %c0_49, %c0_50, %c0_51], %43 {strides = array<i32>} : memref<1x1x2x128xf32, #tpu.memory_space<vmem>>, vector<1x1x1x128xf32>,
    %44 = arith.mulf %38, %38 : vector<256x128xf32>
    %cst_52 = arith.constant dense<0.000000e+00> : vector<128xf32>
    %45 = vector.multi_reduction <add>, %44, %cst_52 [0] : vector<256x128xf32> to vector<128xf32>
    %46 = vector.shape_cast %45 : vector<128xf32> to vector<1x128xf32>
    %c0_53 = arith.constant 0 : index
    %c0_54 = arith.constant 0 : index
    %c1_55 = arith.constant 1 : index
    %c0_56 = arith.constant 0 : index
    %47 = vector.load %arg6[%c0_53, %c0_54, %c1_55, %c0_56] : memref<1x1x2x128xf32, #tpu.memory_space<vmem>>, vector<1x1x1x128xf32>
    %48 = vector.shape_cast %47 : vector<1x1x1x128xf32> to vector<1x128xf32>
    %49 = vector.shape_cast %46 : vector<1x128xf32> to vector<1x1x1x128xf32>
    tpu.vector_store %arg6[%c0_53, %c0_54, %c1_55, %c0_56], %49 {strides = array<i32>} : memref<1x1x2x128xf32, #tpu.memory_space<vmem>>, vector<1x1x1x128xf32>,
    return
  }
  func.func @transform_0(%arg0: i32, %arg1: i32, %arg2: i32) -> (i32, i32, i32, i32, i32) {
    %c0_i32 = arith.constant 0 : i32
    %c0_i32_0 = arith.constant 0 : i32
    %c0_i32_1 = arith.constant 0 : i32
    %c0_i32_2 = arith.constant 0 : i32
    return %arg1, %arg2, %c0_i32, %c0_i32_0, %c0_i32_1 : i32, i32, i32, i32, i32
  }
  func.func @transform_1(%arg0: i32, %arg1: i32, %arg2: i32) -> (i32, i32, i32) {
    %c0_i32 = arith.constant 0 : i32
    %c0_i32_0 = arith.constant 0 : i32
    %c0_i32_1 = arith.constant 0 : i32
    return %c0_i32, %c0_i32_0, %arg0 : i32, i32, i32
  }
  func.func @transform_2(%arg0: i32, %arg1: i32, %arg2: i32) -> (i32, i32, i32, i32) {
    %c0_i32 = arith.constant 0 : i32
    %c0_i32_0 = arith.constant 0 : i32
    return %arg1, %arg2, %c0_i32, %arg0 : i32, i32, i32, i32
  }
  func.func @transform_3(%arg0: i32, %arg1: i32, %arg2: i32) -> (i32, i32, i32, i32) {
    %c0_i32 = arith.constant 0 : i32
    %c0_i32_0 = arith.constant 0 : i32
    return %arg1, %arg2, %c0_i32, %arg0 : i32, i32, i32, i32
  }
}

module attributes {stable_mosaic.version = 11 : i64} {
  func.func @bn_relu_d2s_kernel(%arg0: i32, %arg1: i32, %arg2: memref<1x16x16x128xf32, #tpu.memory_space<vmem>>, %arg3: memref<1x128xf32, #tpu.memory_space<vmem>>, %arg4: memref<1x128xf32, #tpu.memory_space<vmem>>, %arg5: memref<1x16x2x16x16xf32, #tpu.memory_space<vmem>>) attributes {dimension_semantics = [#tpu.dimension_semantics<parallel>, #tpu.dimension_semantics<parallel>], iteration_bounds = array<i64: 2, 1>, scalar_prefetch = 0 : i64, scratch_operands = 0 : i64, tpu.core_type = #tpu.core_type<tc>, window_params = [{transform_indices = @transform_0, window_bounds = array<i64: 1, 16, 16, 128>}, {pipeline_mode = #tpu.pipeline_mode<synchronous>, transform_indices = @transform_1, window_bounds = array<i64: 1, 128>}, {pipeline_mode = #tpu.pipeline_mode<synchronous>, transform_indices = @transform_2, window_bounds = array<i64: 1, 128>}, {transform_indices = @transform_3, window_bounds = array<i64: 1, 16, 2, 16, 16>}]} {
    %c0 = arith.constant 0 : index
    %c0_0 = arith.constant 0 : index
    %c0_1 = arith.constant 0 : index
    %c0_2 = arith.constant 0 : index
    %0 = vector.load %arg2[%c0, %c0_0, %c0_1, %c0_2] : memref<1x16x16x128xf32, #tpu.memory_space<vmem>>, vector<1x16x16x128xf32>
    %1 = vector.shape_cast %0 : vector<1x16x16x128xf32> to vector<16x16x128xf32>
    %c0_3 = arith.constant 0 : index
    %c0_4 = arith.constant 0 : index
    %2 = vector.load %arg3[%c0_3, %c0_4] : memref<1x128xf32, #tpu.memory_space<vmem>>, vector<1x128xf32>
    %3 = vector.shape_cast %2 : vector<1x128xf32> to vector<1x1x128xf32>
    %4 = vector.broadcast %3 : vector<1x1x128xf32> to vector<16x16x128xf32>
    %5 = arith.mulf %1, %4 : vector<16x16x128xf32>
    %c0_5 = arith.constant 0 : index
    %c0_6 = arith.constant 0 : index
    %6 = vector.load %arg4[%c0_5, %c0_6] : memref<1x128xf32, #tpu.memory_space<vmem>>, vector<1x128xf32>
    %7 = vector.shape_cast %6 : vector<1x128xf32> to vector<1x1x128xf32>
    %8 = vector.broadcast %7 : vector<1x1x128xf32> to vector<16x16x128xf32>
    %9 = arith.addf %5, %8 : vector<16x16x128xf32>
    %cst = arith.constant 0.000000e+00 : f32
    %10 = vector.broadcast %cst : f32 to vector<16x16x128xf32>
    %11 = arith.maximumf %9, %10 : vector<16x16x128xf32>
    %12 = vector.extract_strided_slice %11 {offsets = [0, 0, 0], sizes = [16, 16, 16], strides = [1, 1, 1]} : vector<16x16x128xf32> to vector<16x16x16xf32>
    %13 = vector.extract_strided_slice %11 {offsets = [0, 0, 16], sizes = [16, 16, 16], strides = [1, 1, 1]} : vector<16x16x128xf32> to vector<16x16x16xf32>
    %14 = vector.shape_cast %12 : vector<16x16x16xf32> to vector<16x1x16x16xf32>
    %c0_7 = arith.constant 0 : index
    %c0_8 = arith.constant 0 : index
    %c0_9 = arith.constant 0 : index
    %c0_10 = arith.constant 0 : index
    %c0_11 = arith.constant 0 : index
    %15 = vector.load %arg5[%c0_7, %c0_8, %c0_9, %c0_10, %c0_11] : memref<1x16x2x16x16xf32, #tpu.memory_space<vmem>>, vector<1x16x1x16x16xf32>
    %16 = vector.shape_cast %15 : vector<1x16x1x16x16xf32> to vector<16x1x16x16xf32>
    %17 = vector.shape_cast %14 : vector<16x1x16x16xf32> to vector<1x16x1x16x16xf32>
    tpu.vector_store %arg5[%c0_7, %c0_8, %c0_9, %c0_10, %c0_11], %17 {strides = array<i32>} : memref<1x16x2x16x16xf32, #tpu.memory_space<vmem>>, vector<1x16x1x16x16xf32>,
    %18 = vector.shape_cast %13 : vector<16x16x16xf32> to vector<16x1x16x16xf32>
    %c0_12 = arith.constant 0 : index
    %c0_13 = arith.constant 0 : index
    %c1 = arith.constant 1 : index
    %c0_14 = arith.constant 0 : index
    %c0_15 = arith.constant 0 : index
    %19 = vector.load %arg5[%c0_12, %c0_13, %c1, %c0_14, %c0_15] : memref<1x16x2x16x16xf32, #tpu.memory_space<vmem>>, vector<1x16x1x16x16xf32>
    %20 = vector.shape_cast %19 : vector<1x16x1x16x16xf32> to vector<16x1x16x16xf32>
    %21 = vector.shape_cast %18 : vector<16x1x16x16xf32> to vector<1x16x1x16x16xf32>
    tpu.vector_store %arg5[%c0_12, %c0_13, %c1, %c0_14, %c0_15], %21 {strides = array<i32>} : memref<1x16x2x16x16xf32, #tpu.memory_space<vmem>>, vector<1x16x1x16x16xf32>,
    return
  }
  func.func @transform_0(%arg0: i32, %arg1: i32) -> (i32, i32, i32, i32) {
    %c0_i32 = arith.constant 0 : i32
    %c0_i32_0 = arith.constant 0 : i32
    %c0_i32_1 = arith.constant 0 : i32
    return %arg0, %arg1, %c0_i32, %c0_i32_0 : i32, i32, i32, i32
  }
  func.func @transform_1(%arg0: i32, %arg1: i32) -> (i32, i32) {
    %c0_i32 = arith.constant 0 : i32
    %c0_i32_0 = arith.constant 0 : i32
    %c0_i32_1 = arith.constant 0 : i32
    return %c0_i32, %c0_i32_0 : i32, i32
  }
  func.func @transform_2(%arg0: i32, %arg1: i32) -> (i32, i32) {
    %c0_i32 = arith.constant 0 : i32
    %c0_i32_0 = arith.constant 0 : i32
    %c0_i32_1 = arith.constant 0 : i32
    return %c0_i32, %c0_i32_0 : i32, i32
  }
  func.func @transform_3(%arg0: i32, %arg1: i32) -> (i32, i32, i32, i32, i32) {
    %c0_i32 = arith.constant 0 : i32
    %c0_i32_0 = arith.constant 0 : i32
    %c0_i32_1 = arith.constant 0 : i32
    %c0_i32_2 = arith.constant 0 : i32
    return %arg0, %arg1, %c0_i32, %c0_i32_0, %c0_i32_1 : i32, i32, i32, i32, i32
  }
}

</mosaic_0001>

<bundles_post_ra>
// kernel: tile.18
= control target key start
LH: loop header
LB: loop body
LE: loop exit
PB: predicated region body
PF: predicated region fallthrough
CT: control target
= control target key end

     0   :  { %s22_s0 = inlined_call_operand.vmem [shape: f32[8], index: 0, kind: input, shape index: {}]   ;;  %s23_s1 = inlined_call_operand.vmem [shape: f32[4,8], index: 1, kind: output, shape index: {}]  }
   0x1   :  { %v4_v0 = vld [vmem:[%s22_s0] ss:$0 sm:$0xff] }
   0x2   :  { %5 = vst [vmem:[%s23_s1] sm:$0xf] %v4_v0 }

// kernel: tile.19
= control target key start
LH: loop header
LB: loop body
LE: loop exit
PB: predicated region body
PF: predicated region fallthrough
CT: control target
= control target key end

     0   :  { %vm8_vm0 = vcmask 64512   ;;  %s40_s8 = smov 8   ;;  %s41_s9 = smov 16   ;;  %vm14_vm1 = vcmask 261312   ;;  %vm20_vm2 = vcmask 195712   ;;  %vm26_vm3 = vcmask 130112   ;;  %s58_s0 = inlined_call_operand.vmem [shape: f32[4,8], index: 0, kind: input, shape index: {}]   ;;  %s59_s1 = inlined_call_operand.vmem [shape: f32[32], index: 1, kind: output, shape index: {}]  }
   0x1   :  { %v5_v0 = vld [vmem:[%s58_s0] sm:$0xf]  ;;  %s39_s0 = smov 24  }
   0x2   :  { %6 = vst [vmem:[#allocation1] sm:$0xf] %v5_v0 }
   0x9   :  { %v11_v1 = vld [vmem:[#allocation1 + $0x3] sm:$0x1]   ;;  %v23_v2 = vld [vmem:[#allocation1 + $0x1] sm:$0x1]   ;;  %v7_v3 = vld [vmem:[#allocation1] sm:$0x1]  }
   0xa   :  { %12 = vrot.lane.b32.xlu0 %v11_v1, %s39_s0  ;;  %24 = vrot.lane.b32.xlu1 %v23_v2, %s40_s8  ;;  %v17_v4 = vld [vmem:[#allocation1 + $0x2] sm:$0x1]   ;;  %9 = vst.msk [vmem:[#allocation0] sm:$0x1] %vm8_vm0, %v7_v3  }
   0xe   :  { %18 = vrot.lane.b32.xlu0 %v17_v4, %s41_s9 }
  0x7c   :  { %v13_v5 = vpop.permute.xlu0 %12   ;;  %v25_v6 = vpop.permute.xlu1 %24  }
  0x7d   :  { %15 = vst.msk [vmem:[#allocation0] sm:$0x1] %vm14_vm1, %v13_v5  }
  0x80   :  { %v19_v7 = vpop.permute.xlu0 %18  }
  0x81   :  { %21 = vst.msk [vmem:[#allocation0] sm:$0x1] %vm20_vm2, %v19_v7  }
  0x82   :  { %27 = vst.msk [vmem:[#allocation0] sm:$0x1] %vm26_vm3, %v25_v6  }
  0x89   :  { %v32_v8 = vld [vmem:[#allocation0] sm:$0x1] }
  0x8a   :  { %35 = vst [vmem:[%s59_s1] sm:$0x1] %v32_v8 }

// kernel: up_conv_forward.3
= control target key start
LH: loop header
LB: loop body
LE: loop exit
PB: predicated region body
PF: predicated region fallthrough
CT: control target
= control target key end

     0   :  { %s764_s12 = smov 0   ;;  %s766_s13 = smov 0   ;;  %s1188_s0 = inlined_call_operand.vmem [shape: f32[2,16,16,128], index: 0, kind: input, shape index: {}]   ;;  %s1189_s1 = inlined_call_operand.vmem [shape: f32[1,128], index: 1, kind: input, shape index: {}]   ;;  %s1190_s2 = inlined_call_operand.vmem [shape: f32[1,128], index: 2, kind: input, shape index: {}]   ;;  %s1191_s3 = inlined_call_operand.vmem [shape: f32[2,16,2,16,16], index: 3, kind: output, shape index: {}]  }
   0x1   :  { %s768_s14 = smov 0  }
   0x2 LB: > { %s25_s15 = sadd.s32 1, %s737_s13  ;;  %p651_p0 = scmp.ge.s32.totalorder %s741_s14, 1  ;;  %s741_s14 = sphi %s768_s14, %s13_s14   ;;  %s737_s13 = sphi %s766_s13, %s1193_s13   ;;  %s733_s12 = sphi %s764_s12, %s1192_s12  }
   0x3   : > { %p27_p1 = scmp.ge.s32.totalorder %s25_s15, 2  ;;  %p159_p2 = scmp.lt.s32.totalorder %s741_s14, 3 }
   0x5   : > { %s1195_s15 = smov (%p27_p1, %s25_s15), 0  ;;  %p160_p3 = pnand %p651_p0, %p159_p2 }
   0x6   : > { %p194_p4 = scmp.lt.s32.totalorder (!%p160_p3), %s733_s12, 1  ;;  %s743_s28 = smov (!%p160_p3), 112  }
   0x7   : > { %163 = sbr.rel (%p160_p3) target bundleno = 199 (0xc7), region = 32 }
   0xc   : > { %s1197_s12 = smov (!%p194_p4, %s733_s12), 1  ;;  %v788_v0 = vld [vmem:[%s1189_s1] ss:$0 sm:$0xff]  ;;  %vm357_vm0 = vcmask 130048  }
   0xd   : > { %s692_s16 = sshll.u32 %s1197_s12, 8  ;;  %v798_v1 = vld [vmem:[%s1190_s2] ss:$0 sm:$0xff]  ;;  %s693_s24 = sshll.u32 %s1197_s12, 9 }
   0xe   : > { %s793_s21 = scalar_lea.vmem %s1188_s0, %s692_s16  ;;  %s839_s27 = scalar_lea.vmem %s1191_s3, %s693_s24 }
   0xf   : > { %v217_v2 = vld [vmem:[%s793_s21 + $0x10] sm:$0xff]  ;;  %v215_v3 = vld [vmem:[%s793_s21] sm:$0xff]  ;;  %v218_v4 = vld [vmem:[%s793_s21 + $0x18] sm:$0xff] }
  0x10   : > { %v256_v5 = vmul.f32 %v788_v0, %v217_v2  ;;  %v254_v6 = vmul.f32 %v788_v0, %v215_v3  ;;  %v257_v7 = vmul.f32 %v788_v0, %v218_v4  ;;  %v216_v8 = vld [vmem:[%s793_s21 + $0x8] sm:$0xff]  ;;  %v219_v10 = vld [vmem:[%s793_s21 + $0x20] sm:$0xff]  ;;  %v222_v14 = vld [vmem:[%s793_s21 + $0x38] sm:$0xff] }
  0x11   : > { %v220_v9 = vld [vmem:[%s793_s21 + $0x28] sm:$0xff]  ;;  %v255_v11 = vmul.f32 %v788_v0, %v216_v8  ;;  %v258_v13 = vmul.f32 %v788_v0, %v219_v10  ;;  %v221_v15 = vld [vmem:[%s793_s21 + $0x30] sm:$0xff]  ;;  %v261_v19 = vmul.f32 %v788_v0, %v222_v14  ;;  %v223_v25 = vld [vmem:[%s793_s21 + $0x40] sm:$0xff] }
  0x12   : > { %v259_v12 = vmul.f32 %v788_v0, %v220_v9  ;;  %v295_v16 = vadd.f32 %v798_v1, %v256_v5  ;;  %v293_v17 = vadd.f32 %v798_v1, %v254_v6  ;;  %v296_v18 = vadd.f32 %v798_v1, %v257_v7  ;;  %v224_v24 = vld [vmem:[%s793_s21 + $0x48] sm:$0xff]  ;;  %v226_v26 = vld [vmem:[%s793_s21 + $0x58] sm:$0xff]  ;;  %v225_v31 = vld [vmem:[%s793_s21 + $0x50] sm:$0xff] }
  0x13   : > { %v294_v20 = vadd.f32 %v798_v1, %v255_v11  ;;  %v824_v22 = vadd.f32 %v798_v1, %v258_v13  ;;  %v260_v23 = vmul.f32 %v788_v0, %v221_v15  ;;  %v831_v30 = vadd.f32 %v798_v1, %v261_v19  ;;  %v228_v32 = vld [vmem:[%s793_s21 + $0x68] sm:$0xff]  ;;  %v227_v33 = vld [vmem:[%s793_s21 + $0x60] sm:$0xff]  ;;  %v230_v38 = vld [vmem:[%s793_s21 + $0x78] sm:$0xff] }
  0x14   : > { %v821_v21 = vadd.f32 %v798_v1, %v259_v12  ;;  %v327_v27 = vmax.f32 %v295_v16, 0.0  ;;  %v325_v28 = vmax.f32 %v293_v17, 0.0  ;;  %v328_v29 = vmax.f32 %v296_v18, 0.0  ;;  %v229_v43 = vld [vmem:[%s793_s21 + $0x70] sm:$0xff]  ;;  %v232_v52 = vld [vmem:[%s793_s21 + $0x88] sm:$0xff]  ;;  %v231_v57 = vld [vmem:[%s793_s21 + $0x80] sm:$0xff] }
  0x15   : > { %v326_v34 = vmax.f32 %v294_v20, 0.0  ;;  %v329_v36 = vmax.f32 %v824_v22, 0.0  ;;  %v844_v37 = vadd.f32 %v798_v1, %v260_v23  ;;  %v332_v39 = vmax.f32 %v831_v30, 0.0  ;;  %v234_v58 = vld [vmem:[%s793_s21 + $0x98] sm:$0xff]  ;;  %v233_v59 = vld [vmem:[%s793_s21 + $0x90] sm:$0xff]  ;;  %v236_v2 = vld [vmem:[%s793_s21 + $0xa8] sm:$0xff] }
  0x16   : > { %v330_v35 = vmax.f32 %v821_v21, 0.0  ;;  %426 = vrot.lane.b32.xlu1 %v327_v27, %s743_s28  ;;  %360 = vst.msk [vmem:[%s839_s27 + $0x20] sm:$0xff] %vm357_vm0, %v327_v27  ;;  %422 = vrot.lane.b32.xlu0 %v325_v28, %s743_s28  ;;  %358 = vst.msk [vmem:[%s839_s27] sm:$0xff] %vm357_vm0, %v325_v28  ;;  %v263_v40 = vmul.f32 %v788_v0, %v224_v24  ;;  %v262_v41 = vmul.f32 %v788_v0, %v223_v25 }
  0x17   : > { %361 = vst.msk [vmem:[%s839_s27 + $0x28] sm:$0xff] %vm357_vm0, %v328_v29  ;;  %v265_v42 = vmul.f32 %v788_v0, %v226_v26  ;;  %359 = vst.msk [vmem:[%s839_s27 + $0x8] sm:$0xff] %vm357_vm0, %v326_v34  ;;  %v331_v44 = vmax.f32 %v844_v37, 0.0  ;;  %v264_v45 = vmul.f32 %v788_v0, %v225_v31  ;;  %v267_v46 = vmul.f32 %v788_v0, %v228_v32  ;;  %v235_v3 = vld [vmem:[%s793_s21 + $0xa0] sm:$0xff]  ;;  %v238_v12 = vld [vmem:[%s793_s21 + $0xb8] sm:$0xff] }
  0x18   : > { %363 = vst.msk [vmem:[%s839_s27 + $0x48] sm:$0xff] %vm357_vm0, %v330_v35  ;;  %362 = vst.msk [vmem:[%s839_s27 + $0x40] sm:$0xff] %vm357_vm0, %v329_v36  ;;  %v266_v47 = vmul.f32 %v788_v0, %v227_v33  ;;  %v879_v48 = vadd.f32 %v798_v1, %v263_v40  ;;  %v882_v49 = vadd.f32 %v798_v1, %v262_v41  ;;  %v237_v17 = vld [vmem:[%s793_s21 + $0xb0] sm:$0xff]  ;;  %v240_v25 = vld [vmem:[%s793_s21 + $0xc8] sm:$0xff] }
  0x19   : > { %365 = vst.msk [vmem:[%s839_s27 + $0x68] sm:$0xff] %vm357_vm0, %v332_v39  ;;  %v885_v50 = vadd.f32 %v798_v1, %v265_v42  ;;  %v269_v51 = vmul.f32 %v788_v0, %v230_v38  ;;  %364 = vst.msk [vmem:[%s839_s27 + $0x60] sm:$0xff] %vm357_vm0, %v331_v44  ;;  %v894_v53 = vadd.f32 %v798_v1, %v264_v45  ;;  %v239_v26 = vld [vmem:[%s793_s21 + $0xc0] sm:$0xff]  ;;  %v242_v32 = vld [vmem:[%s793_s21 + $0xd8] sm:$0xff] }
  0x1a   : > { %v897_v54 = vadd.f32 %v798_v1, %v267_v46  ;;  %v900_v55 = vadd.f32 %v798_v1, %v266_v47  ;;  %v268_v56 = vmul.f32 %v788_v0, %v229_v43  ;;  %428 = vrot.lane.b32.xlu1 %v328_v29, %s743_s28  ;;  %424 = vrot.lane.b32.xlu0 %v326_v34, %s743_s28  ;;  %v334_v60 = vmax.f32 %v879_v48, 0.0  ;;  %v241_v33 = vld [vmem:[%s793_s21 + $0xd0] sm:$0xff]  ;;  %v244_v34 = vld [vmem:[%s793_s21 + $0xe8] sm:$0xff] }
  0x1b   : > { %v333_v61 = vmax.f32 %v882_v49, 0.0  ;;  %v336_v62 = vmax.f32 %v885_v50, 0.0  ;;  %v912_v63 = vadd.f32 %v798_v1, %v269_v51  ;;  %v335_v4 = vmax.f32 %v894_v53, 0.0  ;;  %v243_v41 = vld [vmem:[%s793_s21 + $0xe0] sm:$0xff]  ;;  %v246_v42 = vld [vmem:[%s793_s21 + $0xf8] sm:$0xff]  ;;  %v245_v47 = vld [vmem:[%s793_s21 + $0xf0] sm:$0xff] }
  0x1c   : > { %v338_v5 = vmax.f32 %v897_v54, 0.0  ;;  %v337_v6 = vmax.f32 %v900_v55, 0.0  ;;  %v920_v7 = vadd.f32 %v798_v1, %v268_v56  ;;  %367 = vst.msk [vmem:[%s839_s27 + $0x88] sm:$0xff] %vm357_vm0, %v334_v60  ;;  %v271_v9 = vmul.f32 %v788_v0, %v232_v52 }
  0x1d   : > { %366 = vst.msk [vmem:[%s839_s27 + $0x80] sm:$0xff] %vm357_vm0, %v333_v61  ;;  %369 = vst.msk [vmem:[%s839_s27 + $0xa8] sm:$0xff] %vm357_vm0, %v336_v62  ;;  %v340_v8 = vmax.f32 %v912_v63, 0.0  ;;  %v270_v10 = vmul.f32 %v788_v0, %v231_v57  ;;  %v273_v11 = vmul.f32 %v788_v0, %v234_v58  ;;  %v272_v14 = vmul.f32 %v788_v0, %v233_v59 }
  0x1e   : > { %368 = vst.msk [vmem:[%s839_s27 + $0xa0] sm:$0xff] %vm357_vm0, %v335_v4  ;;  %371 = vst.msk [vmem:[%s839_s27 + $0xc8] sm:$0xff] %vm357_vm0, %v338_v5  ;;  %v339_v13 = vmax.f32 %v920_v7, 0.0  ;;  %v275_v15 = vmul.f32 %v788_v0, %v236_v2  ;;  %v274_v16 = vmul.f32 %v788_v0, %v235_v3  ;;  %432 = vrot.lane.b32.xlu1 %v330_v35, %s743_s28  ;;  %430 = vrot.lane.b32.xlu0 %v329_v36, %s743_s28 }
  0x1f   : > { %370 = vst.msk [vmem:[%s839_s27 + $0xc0] sm:$0xff] %vm357_vm0, %v337_v6  ;;  %373 = vst.msk [vmem:[%s839_s27 + $0xe8] sm:$0xff] %vm357_vm0, %v340_v8  ;;  %v967_v18 = vadd.f32 %v798_v1, %v271_v9  ;;  %v970_v19 = vadd.f32 %v798_v1, %v270_v10  ;;  %v973_v20 = vadd.f32 %v798_v1, %v273_v11 }
  0x20   : > { %372 = vst.msk [vmem:[%s839_s27 + $0xe0] sm:$0xff] %vm357_vm0, %v339_v13  ;;  %v980_v21 = vadd.f32 %v798_v1, %v272_v14  ;;  %v983_v22 = vadd.f32 %v798_v1, %v275_v15  ;;  %v986_v23 = vadd.f32 %v798_v1, %v274_v16  ;;  %v277_v24 = vmul.f32 %v788_v0, %v238_v12 }
  0x21   : > { %v342_v27 = vmax.f32 %v967_v18, 0.0  ;;  %v341_v28 = vmax.f32 %v970_v19, 0.0  ;;  %v344_v29 = vmax.f32 %v973_v20, 0.0  ;;  %v276_v31 = vmul.f32 %v788_v0, %v237_v17 }
  0x22   : > { %v343_v35 = vmax.f32 %v980_v21, 0.0  ;;  %v346_v36 = vmax.f32 %v983_v22, 0.0  ;;  %v345_v38 = vmax.f32 %v986_v23, 0.0  ;;  %v1002_v40 = vadd.f32 %v798_v1, %v277_v24  ;;  %436 = vrot.lane.b32.xlu1 %v332_v39, %s743_s28  ;;  %434 = vrot.lane.b32.xlu0 %v331_v44, %s743_s28 }
  0x23   : > { %375 = vst.msk [vmem:[%s839_s27 + $0x108] sm:$0xff] %vm357_vm0, %v342_v27  ;;  %374 = vst.msk [vmem:[%s839_s27 + $0x100] sm:$0xff] %vm357_vm0, %v341_v28  ;;  %v315_v30 = vadd.f32 %v798_v1, %v276_v31  ;;  %v279_v39 = vmul.f32 %v788_v0, %v240_v25  ;;  %v278_v37 = vmul.f32 %v788_v0, %v239_v26 }
  0x24   : > { %377 = vst.msk [vmem:[%s839_s27 + $0x128] sm:$0xff] %vm357_vm0, %v344_v29  ;;  %376 = vst.msk [vmem:[%s839_s27 + $0x120] sm:$0xff] %vm357_vm0, %v343_v35  ;;  %v348_v43 = vmax.f32 %v1002_v40, 0.0  ;;  %v281_v44 = vmul.f32 %v788_v0, %v242_v32  ;;  %v280_v45 = vmul.f32 %v788_v0, %v241_v33  ;;  %v283_v46 = vmul.f32 %v788_v0, %v244_v34 }
  0x25   : > { %379 = vst.msk [vmem:[%s839_s27 + $0x148] sm:$0xff] %vm357_vm0, %v346_v36  ;;  %378 = vst.msk [vmem:[%s839_s27 + $0x140] sm:$0xff] %vm357_vm0, %v345_v38  ;;  %v347_v51 = vmax.f32 %v315_v30, 0.0  ;;  %v318_v52 = vadd.f32 %v798_v1, %v279_v39  ;;  %v317_v56 = vadd.f32 %v798_v1, %v278_v37  ;;  %v282_v57 = vmul.f32 %v788_v0, %v243_v41 }
  0x26   : > { %381 = vst.msk [vmem:[%s839_s27 + $0x168] sm:$0xff] %vm357_vm0, %v348_v43  ;;  %v320_v58 = vadd.f32 %v798_v1, %v281_v44  ;;  %v319_v59 = vadd.f32 %v798_v1, %v280_v45  ;;  %v322_v2 = vadd.f32 %v798_v1, %v283_v46  ;;  %v285_v3 = vmul.f32 %v788_v0, %v246_v42 }
  0x27   : > { %440 = vrot.lane.b32.xlu1 %v334_v60, %s743_s28  ;;  %438 = vrot.lane.b32.xlu0 %v333_v61, %s743_s28  ;;  %380 = vst.msk [vmem:[%s839_s27 + $0x160] sm:$0xff] %vm357_vm0, %v347_v51  ;;  %v350_v9 = vmax.f32 %v318_v52, 0.0  ;;  %v349_v10 = vmax.f32 %v317_v56, 0.0  ;;  %v321_v11 = vadd.f32 %v798_v1, %v282_v57  ;;  %v284_v12 = vmul.f32 %v788_v0, %v245_v47 }
  0x28   : > { %v352_v14 = vmax.f32 %v320_v58, 0.0  ;;  %v351_v48 = vmax.f32 %v319_v59, 0.0  ;;  %v354_v60 = vmax.f32 %v322_v2, 0.0  ;;  %v324_v15 = vadd.f32 %v798_v1, %v285_v3 }
  0x29   : > { %383 = vst.msk [vmem:[%s839_s27 + $0x188] sm:$0xff] %vm357_vm0, %v350_v9  ;;  %382 = vst.msk [vmem:[%s839_s27 + $0x180] sm:$0xff] %vm357_vm0, %v349_v10  ;;  %v353_v49 = vmax.f32 %v321_v11, 0.0  ;;  %v323_v61 = vadd.f32 %v798_v1, %v284_v12 }
  0x2a   : > { %385 = vst.msk [vmem:[%s839_s27 + $0x1a8] sm:$0xff] %vm357_vm0, %v352_v14  ;;  %384 = vst.msk [vmem:[%s839_s27 + $0x1a0] sm:$0xff] %vm357_vm0, %v351_v48  ;;  %v356_v0 = vmax.f32 %v324_v15, 0.0 }
  0x2b   : > { %387 = vst.msk [vmem:[%s839_s27 + $0x1c8] sm:$0xff] %vm357_vm0, %v354_v60  ;;  %444 = vrot.lane.b32.xlu1 %v336_v62, %s743_s28  ;;  %442 = vrot.lane.b32.xlu0 %v335_v4, %s743_s28  ;;  %386 = vst.msk [vmem:[%s839_s27 + $0x1c0] sm:$0xff] %vm357_vm0, %v353_v49  ;;  %v355_v16 = vmax.f32 %v323_v61, 0.0 }
  0x2c   : > { %389 = vst.msk [vmem:[%s839_s27 + $0x1e8] sm:$0xff] %vm357_vm0, %v356_v0 }
  0x2d   : > { %388 = vst.msk [vmem:[%s839_s27 + $0x1e0] sm:$0xff] %vm357_vm0, %v355_v16 }
  0x2f   : > { %448 = vrot.lane.b32.xlu1 %v338_v5, %s743_s28  ;;  %446 = vrot.lane.b32.xlu0 %v337_v6, %s743_s28 }
  0x33   : > { %452 = vrot.lane.b32.xlu1 %v340_v8, %s743_s28  ;;  %450 = vrot.lane.b32.xlu0 %v339_v13, %s743_s28 }
  0x37   : > { %456 = vrot.lane.b32.xlu1 %v342_v27, %s743_s28  ;;  %454 = vrot.lane.b32.xlu0 %v341_v28, %s743_s28 }
  0x3b   : > { %460 = vrot.lane.b32.xlu1 %v344_v29, %s743_s28  ;;  %458 = vrot.lane.b32.xlu0 %v343_v35, %s743_s28 }
  0x3f   : > { %464 = vrot.lane.b32.xlu1 %v346_v36, %s743_s28  ;;  %462 = vrot.lane.b32.xlu0 %v345_v38, %s743_s28 }
  0x43   : > { %468 = vrot.lane.b32.xlu1 %v348_v43, %s743_s28  ;;  %466 = vrot.lane.b32.xlu0 %v347_v51, %s743_s28 }
  0x47   : > { %472 = vrot.lane.b32.xlu1 %v350_v9, %s743_s28  ;;  %470 = vrot.lane.b32.xlu0 %v349_v10, %s743_s28 }
  0x4b   : > { %476 = vrot.lane.b32.xlu1 %v352_v14, %s743_s28  ;;  %474 = vrot.lane.b32.xlu0 %v351_v48, %s743_s28 }
  0x4f   : > { %480 = vrot.lane.b32.xlu1 %v354_v60, %s743_s28  ;;  %478 = vrot.lane.b32.xlu0 %v353_v49, %s743_s28 }
  0x53   : > { %484 = vrot.lane.b32.xlu1 %v356_v0, %s743_s28  ;;  %482 = vrot.lane.b32.xlu0 %v355_v16, %s743_s28 }
  0x88   : > { %v427_v1 = vpop.permute.xlu1 %426  ;;  %v423_v50 = vpop.permute.xlu0 %422 }
  0x89   : > { %660 = vst.msk [vmem:[%s839_s27 + $0x30] sm:$0xff] %vm357_vm0, %v427_v1  ;;  %658 = vst.msk [vmem:[%s839_s27 + $0x10] sm:$0xff] %vm357_vm0, %v423_v50 }
  0x8c   : > { %v429_v53 = vpop.permute.xlu1 %428  ;;  %v425_v54 = vpop.permute.xlu0 %424 }
  0x8d   : > { %661 = vst.msk [vmem:[%s839_s27 + $0x38] sm:$0xff] %vm357_vm0, %v429_v53  ;;  %659 = vst.msk [vmem:[%s839_s27 + $0x18] sm:$0xff] %vm357_vm0, %v425_v54 }
  0x90   : > { %v433_v55 = vpop.permute.xlu1 %432  ;;  %v431_v62 = vpop.permute.xlu0 %430 }
  0x91   : > { %663 = vst.msk [vmem:[%s839_s27 + $0x58] sm:$0xff] %vm357_vm0, %v433_v55  ;;  %662 = vst.msk [vmem:[%s839_s27 + $0x50] sm:$0xff] %vm357_vm0, %v431_v62 }
  0x94   : > { %v437_v63 = vpop.permute.xlu1 %436  ;;  %v435_v4 = vpop.permute.xlu0 %434 }
  0x95   : > { %665 = vst.msk [vmem:[%s839_s27 + $0x78] sm:$0xff] %vm357_vm0, %v437_v63  ;;  %664 = vst.msk [vmem:[%s839_s27 + $0x70] sm:$0xff] %vm357_vm0, %v435_v4 }
  0x99   : > { %v441_v5 = vpop.permute.xlu1 %440  ;;  %v439_v6 = vpop.permute.xlu0 %438 }
  0x9a   : > { %667 = vst.msk [vmem:[%s839_s27 + $0x98] sm:$0xff] %vm357_vm0, %v441_v5  ;;  %666 = vst.msk [vmem:[%s839_s27 + $0x90] sm:$0xff] %vm357_vm0, %v439_v6 }
  0x9d   : > { %v445_v7 = vpop.permute.xlu1 %444  ;;  %v443_v8 = vpop.permute.xlu0 %442 }
  0x9e   : > { %669 = vst.msk [vmem:[%s839_s27 + $0xb8] sm:$0xff] %vm357_vm0, %v445_v7  ;;  %668 = vst.msk [vmem:[%s839_s27 + $0xb0] sm:$0xff] %vm357_vm0, %v443_v8 }
  0xa1   : > { %v449_v13 = vpop.permute.xlu1 %448  ;;  %v447_v17 = vpop.permute.xlu0 %446 }
  0xa2   : > { %671 = vst.msk [vmem:[%s839_s27 + $0xd8] sm:$0xff] %vm357_vm0, %v449_v13  ;;  %670 = vst.msk [vmem:[%s839_s27 + $0xd0] sm:$0xff] %vm357_vm0, %v447_v17 }
  0xa5   : > { %v453_v18 = vpop.permute.xlu1 %452  ;;  %v451_v19 = vpop.permute.xlu0 %450 }
  0xa6   : > { %673 = vst.msk [vmem:[%s839_s27 + $0xf8] sm:$0xff] %vm357_vm0, %v453_v18  ;;  %672 = vst.msk [vmem:[%s839_s27 + $0xf0] sm:$0xff] %vm357_vm0, %v451_v19 }
  0xa9   : > { %v457_v20 = vpop.permute.xlu1 %456  ;;  %v455_v21 = vpop.permute.xlu0 %454 }
  0xaa   : > { %675 = vst.msk [vmem:[%s839_s27 + $0x118] sm:$0xff] %vm357_vm0, %v457_v20  ;;  %674 = vst.msk [vmem:[%s839_s27 + $0x110] sm:$0xff] %vm357_vm0, %v455_v21 }
  0xad   : > { %v461_v22 = vpop.permute.xlu1 %460  ;;  %v459_v23 = vpop.permute.xlu0 %458 }
  0xae   : > { %677 = vst.msk [vmem:[%s839_s27 + $0x138] sm:$0xff] %vm357_vm0, %v461_v22  ;;  %676 = vst.msk [vmem:[%s839_s27 + $0x130] sm:$0xff] %vm357_vm0, %v459_v23 }
  0xb1   : > { %v465_v24 = vpop.permute.xlu1 %464  ;;  %v463_v25 = vpop.permute.xlu0 %462 }
  0xb2   : > { %679 = vst.msk [vmem:[%s839_s27 + $0x158] sm:$0xff] %vm357_vm0, %v465_v24  ;;  %678 = vst.msk [vmem:[%s839_s27 + $0x150] sm:$0xff] %vm357_vm0, %v463_v25 }
  0xb5   : > { %v469_v26 = vpop.permute.xlu1 %468  ;;  %v467_v27 = vpop.permute.xlu0 %466 }
  0xb6   : > { %681 = vst.msk [vmem:[%s839_s27 + $0x178] sm:$0xff] %vm357_vm0, %v469_v26  ;;  %680 = vst.msk [vmem:[%s839_s27 + $0x170] sm:$0xff] %vm357_vm0, %v467_v27 }
  0xb9   : > { %v473_v28 = vpop.permute.xlu1 %472  ;;  %v471_v29 = vpop.permute.xlu0 %470 }
  0xba   : > { %683 = vst.msk [vmem:[%s839_s27 + $0x198] sm:$0xff] %vm357_vm0, %v473_v28  ;;  %682 = vst.msk [vmem:[%s839_s27 + $0x190] sm:$0xff] %vm357_vm0, %v471_v29 }
  0xbd   : > { %v477_v31 = vpop.permute.xlu1 %476  ;;  %v475_v32 = vpop.permute.xlu0 %474 }
  0xbe   : > { %685 = vst.msk [vmem:[%s839_s27 + $0x1b8] sm:$0xff] %vm357_vm0, %v477_v31  ;;  %684 = vst.msk [vmem:[%s839_s27 + $0x1b0] sm:$0xff] %vm357_vm0, %v475_v32 }
  0xc1   : > { %v481_v33 = vpop.permute.xlu1 %480  ;;  %v479_v34 = vpop.permute.xlu0 %478 }
  0xc2   : > { %687 = vst.msk [vmem:[%s839_s27 + $0x1d8] sm:$0xff] %vm357_vm0, %v481_v33  ;;  %686 = vst.msk [vmem:[%s839_s27 + $0x1d0] sm:$0xff] %vm357_vm0, %v479_v34 }
  0xc5   : > { %v485_v35 = vpop.permute.xlu1 %484  ;;  %v483_v36 = vpop.permute.xlu0 %482 }
  0xc6   : > { %689 = vst.msk [vmem:[%s839_s27 + $0x1f8] sm:$0xff] %vm357_vm0, %v485_v35  ;;  %688 = vst.msk [vmem:[%s839_s27 + $0x1f0] sm:$0xff] %vm357_vm0, %v483_v36 }
  0xc7 PF: > { %s13_s14 = sadd.s32 1, %s741_s14   ;;  %s1192_s12 = smov %s737_s13 }
  0xc8   : > { %p10_p5 = scmp.ge.s32.totalorder %s13_s14, 4   ;;  %s1193_s13 = smov %s1195_s15 }
  0xca   :  { %12 = sbr.rel (!%p10_p5) target bundleno = 2 (0x2), region = 63 }

// kernel: up_conv_forward.2
= control target key start
LH: loop header
LB: loop body
LE: loop exit
PB: predicated region body
PF: predicated region fallthrough
CT: control target
= control target key end

     0   :  { %s2399_s12 = smov 0   ;;  %s2401_s13 = smov 0   ;;  %s2786_s0 = inlined_call_operand.vmem [shape: f32[2,1,18,16,12], index: 0, kind: input, shape index: {}]   ;;  %s2787_s1 = inlined_call_operand.vmem [shape: f32[3,12,128], index: 1, kind: input, shape index: {}]   ;;  %s2788_s2 = inlined_call_operand.vmem [shape: f32[2,16,16,128], index: 2, kind: output, shape index: {0}]   ;;  %s2789_s3 = inlined_call_operand.vmem [shape: f32[2,1,2,128], index: 3, kind: output, shape index: {1}]  }
   0x1   :  { %s2403_s14 = smov 0  }
   0x2 LB: > { %s29_s15 = sadd.s32 1, %s2373_s13  ;;  %p1893_p0 = scmp.ge.s32.totalorder %s2377_s14, 1  ;;  %s2377_s14 = sphi %s2403_s14, %s14_s14   ;;  %s2373_s13 = sphi %s2401_s13, %s2791_s13   ;;  %s2369_s12 = sphi %s2399_s12, %s2790_s12  }
   0x3   : > { %p31_p1 = scmp.ge.s32.totalorder %s29_s15, 2  ;;  %p182_p2 = scmp.lt.s32.totalorder %s2377_s14, 3 }
   0x5   : > { %s2793_s15 = smov (%p31_p1, %s29_s15), 0  ;;  %p183_p3 = pnand %p1893_p0, %p182_p2 }
   0x6   : > { %p232_p4 = scmp.lt.s32.totalorder (!%p183_p3), %s2369_s12, 1 }
   0x7   : > { %186 = sbr.rel (%p183_p3) target bundleno = 329 (0x149), region = 28 }
   0xc   : > { %v302_v0 = vld [vmem:[%s2787_s1 + $0x8] sm:$0xf]  ;;  %vm400_vm0 = vcmask 1043456   ;;  %v301_v1 = vld [vmem:[%s2787_s1] sm:$0xff]  ;;  %s2795_s12 = smov (!%p232_p4, %s2369_s12), 1  ;;  %vm303_vm1 = vcmask 97280  }
   0xd   : > { %2326 = vmatprep.subr.msk.mxu1 %vm400_vm0, %v302_v0  ;;  %2170 = vmatprep.subr.msk.mxu0 %vm400_vm0, %v302_v0  ;;  %v1964_v2 = vld [vmem:[%s2787_s1 + $0x18] sm:$0xf]  ;;  %v2031_v3 = vld [vmem:[%s2787_s1 + $0x28] sm:$0xf]  ;;  %s2330_s24 = smul.u32 288, %s2795_s12  ;;  %v1963_v8 = vld [vmem:[%s2787_s1 + $0x10] sm:$0xff] }
   0xe   : > { %2328 = vmatpush3.msk.msra.mxu1 %vm400_vm0, %v302_v0  ;;  %2171 = vmatpush3.msk.msra.mxu0 %vm400_vm0, %v302_v0  ;;  %v2030_v12 = vld [vmem:[%s2787_s1 + $0x20] sm:$0xff]  ;;  %s2067_s5 = sshll.u32 %s2795_s12, 8  ;;  %s1897_s9 = sshll.u32 %s2795_s12, 1 }
   0xf   : > { %2327 = vmatprep.subr.mxu1 %v301_v1  ;;  %2172 = vmatprep.subr.mxu0 %v301_v1  ;;  %s2441_s27 = scalar_lea.vmem %s2786_s0, %s2330_s24  ;;  %s2715_s8 = scalar_lea.vmem %s2788_s2, %s2067_s5 }
  0x10   : > { %2329 = vmatpush3.msra.mxu1 %v301_v1  ;;  %2173 = vmatpush3.msra.mxu0 %v301_v1  ;;  %v2444_v4 = vld [vmem:[%s2441_s27 + $0x80] sm:$0xff]  ;;  %v2447_v5 = vld [vmem:[%s2441_s27 + $0x88] sm:$0xff]  ;;  %v2450_v6 = vld [vmem:[%s2441_s27 + $0x90] sm:$0xff]  ;;  %s268_s16 = scalar_lea.vmem %s2789_s3, %s1897_s9 }
  0x11   : > { %2222 = vmatprep.subr.msk.mxu1 %vm400_vm0, %v1964_v2  ;;  %2274 = vmatprep.subr.msk.mxu0 %vm400_vm0, %v2031_v3  ;;  %v269_v7 = vld [vmem:[%s2441_s27] sm:$0xff]  ;;  %v270_v9 = vld [vmem:[%s2441_s27 + $0x8] sm:$0xff]  ;;  %v271_v10 = vld [vmem:[%s2441_s27 + $0x10] sm:$0xff] }
  0x12   : > { %2198 = vmatprep.mubr.msk.f32.mxu1 %vm303_vm1, %v2444_v4  ;;  %2174 = vmatprep.mubr.msk.f32.mxu0 %vm303_vm1, %v269_v7  ;;  %v2467_v11 = vld [vmem:[%s2441_s27 + $0x98] sm:$0xff]  ;;  %v2473_v13 = vld [vmem:[%s2441_s27 + $0xa0] sm:$0xff]  ;;  %v2485_v16 = vld [vmem:[%s2441_s27 + $0xa8] sm:$0xff] }
  0x13   : > { %2199 = vmatmul.mubr.msk.f32.vlgmr.msra.gmra.mxu1 %vm303_vm1, %v2447_v5  ;;  %2175 = vmatmul.mubr.msk.f32.vlgmr.msra.gmra.mxu0 %vm303_vm1, %v270_v9  ;;  %v272_v14 = vld [vmem:[%s2441_s27 + $0x18] sm:$0xff]  ;;  %v273_v15 = vld [vmem:[%s2441_s27 + $0x20] sm:$0xff]  ;;  %v2488_v17 = vld [vmem:[%s2441_s27 + $0xb0] sm:$0xff] }
  0x14   : > { %2223 = vmatpush3.msk.msra.mxu1 %vm400_vm0, %v1964_v2  ;;  %2201 = vmatprep.mubr.msk.f32.mxu1 %vm303_vm1, %v2450_v6  ;;  %v274_v18 = vld [vmem:[%s2441_s27 + $0x28] sm:$0xff]  ;;  %v275_v19 = vld [vmem:[%s2441_s27 + $0x30] sm:$0xff]  ;;  %v2499_v20 = vld [vmem:[%s2441_s27 + $0xb8] sm:$0xff] }
  0x15   : > { %2224 = vmatprep.subr.mxu1 %v1963_v8  ;;  %2275 = vmatpush3.msk.msra.mxu0 %vm400_vm0, %v2031_v3  ;;  %v2502_v21 = vld [vmem:[%s2441_s27 + $0xc0] sm:$0xff]  ;;  %v276_v22 = vld [vmem:[%s2441_s27 + $0x38] sm:$0xff]  ;;  %v2513_v24 = vld [vmem:[%s2441_s27 + $0xc8] sm:$0xff] }
  0x16   : > { %2177 = vmatprep.mubr.msk.f32.mxu0 %vm303_vm1, %v271_v10  ;;  %2276 = vmatprep.subr.mxu0 %v2030_v12  ;;  %v277_v23 = vld [vmem:[%s2441_s27 + $0x40] sm:$0xff]  ;;  %v2516_v25 = vld [vmem:[%s2441_s27 + $0xd0] sm:$0xff]  ;;  %v278_v26 = vld [vmem:[%s2441_s27 + $0x48] sm:$0xff] }
  0x17   : > { %2202 = vmatmul.mubr.msk.f32.gmra.mxu1 %vm303_vm1, %v2467_v11  ;;  %2178 = vmatmul.mubr.msk.f32.gmra.mxu0 %vm303_vm1, %v272_v14  ;;  %v279_v27 = vld [vmem:[%s2441_s27 + $0x50] sm:$0xff]  ;;  %v2527_v28 = vld [vmem:[%s2441_s27 + $0xd8] sm:$0xff]  ;;  %v2530_v29 = vld [vmem:[%s2441_s27 + $0xe0] sm:$0xff] }
  0x18   : > { %2204 = vmatprep.mubr.msk.f32.mxu1 %vm303_vm1, %v2473_v13  ;;  %2225 = vmatpush3.msra.mxu1 %v1963_v8  ;;  %v280_v30 = vld [vmem:[%s2441_s27 + $0x58] sm:$0xff]  ;;  %v281_v31 = vld [vmem:[%s2441_s27 + $0x60] sm:$0xff]  ;;  %v2541_v32 = vld [vmem:[%s2441_s27 + $0xe8] sm:$0xff] }
  0x19   : > { %2180 = vmatprep.mubr.msk.f32.mxu0 %vm303_vm1, %v273_v15  ;;  %2277 = vmatpush3.msra.mxu0 %v2030_v12  ;;  %v2544_v33 = vld [vmem:[%s2441_s27 + $0xf0] sm:$0xff]  ;;  %v282_v34 = vld [vmem:[%s2441_s27 + $0x68] sm:$0xff]  ;;  %v2555_v36 = vld [vmem:[%s2441_s27 + $0xf8] sm:$0xff] }
  0x1a   : > { %v283_v35 = vld [vmem:[%s2441_s27 + $0x70] sm:$0xff]  ;;  %v284_v37 = vld [vmem:[%s2441_s27 + $0x78] sm:$0xff]  ;;  %v1961_v38 = vld [vmem:[%s2441_s27 + $0x100] sm:$0xff] }
  0x1b   : > { %2205 = vmatmul.mubr.msk.f32.gmra.mxu1 %vm303_vm1, %v2485_v16  ;;  %2181 = vmatmul.mubr.msk.f32.gmra.mxu0 %vm303_vm1, %v274_v18  ;;  %v1962_v39 = vld [vmem:[%s2441_s27 + $0x108] sm:$0xff]  ;;  %v2028_v40 = vld [vmem:[%s2441_s27 + $0x110] sm:$0xff]  ;;  %v2029_v41 = vld [vmem:[%s2441_s27 + $0x118] sm:$0xff] }
  0x1c   : > { %2207 = vmatprep.mubr.msk.f32.mxu1 %vm303_vm1, %v2488_v17  ;;  %2183 = vmatprep.mubr.msk.f32.mxu0 %vm303_vm1, %v275_v19 }
  0x1f   : > { %2208 = vmatmul.mubr.msk.f32.gmra.mxu1 %vm303_vm1, %v2499_v20  ;;  %2184 = vmatmul.mubr.msk.f32.gmra.mxu0 %vm303_vm1, %v276_v22 }
  0x20   : > { %2210 = vmatprep.mubr.msk.f32.mxu1 %vm303_vm1, %v2502_v21  ;;  %2186 = vmatprep.mubr.msk.f32.mxu0 %vm303_vm1, %v277_v23 }
  0x23   : > { %2211 = vmatmul.mubr.msk.f32.gmra.mxu1 %vm303_vm1, %v2513_v24  ;;  %2187 = vmatmul.mubr.msk.f32.gmra.mxu0 %vm303_vm1, %v278_v26 }
  0x24   : > { %2213 = vmatprep.mubr.msk.f32.mxu1 %vm303_vm1, %v2516_v25  ;;  %2189 = vmatprep.mubr.msk.f32.mxu0 %vm303_vm1, %v279_v27 }
  0x27   : > { %2214 = vmatmul.mubr.msk.f32.gmra.mxu1 %vm303_vm1, %v2527_v28  ;;  %2190 = vmatmul.mubr.msk.f32.gmra.mxu0 %vm303_vm1, %v280_v30 }
  0x28   : > { %2216 = vmatprep.mubr.msk.f32.mxu1 %vm303_vm1, %v2530_v29  ;;  %2192 = vmatprep.mubr.msk.f32.mxu0 %vm303_vm1, %v281_v31 }
  0x2b   : > { %2217 = vmatmul.mubr.msk.f32.gmra.mxu1 %vm303_vm1, %v2541_v32  ;;  %2193 = vmatmul.mubr.msk.f32.gmra.mxu0 %vm303_vm1, %v282_v34 }
  0x2c   : > { %2219 = vmatprep.mubr.msk.f32.mxu1 %vm303_vm1, %v2544_v33  ;;  %2195 = vmatprep.mubr.msk.f32.mxu0 %vm303_vm1, %v283_v35 }
  0x2f   : > { %2220 = vmatmul.mubr.msk.f32.gmra.mxu1 %vm303_vm1, %v2555_v36  ;;  %2196 = vmatmul.mubr.msk.f32.gmra.mxu0 %vm303_vm1, %v284_v37 }
  0x30   : > { %2226 = vmatprep.mubr.msk.f32.mxu1 %vm303_vm1, %v271_v10  ;;  %2278 = vmatprep.mubr.msk.f32.mxu0 %vm303_vm1, %v273_v15 }
  0x33   : > { %2227 = vmatmul.mubr.msk.f32.vlgmr.msra.gmra.mxu1 %vm303_vm1, %v272_v14  ;;  %2279 = vmatmul.mubr.msk.f32.vlgmr.msra.gmra.mxu0 %vm303_vm1, %v274_v18 }
  0x34   : > { %2229 = vmatprep.mubr.msk.f32.mxu1 %vm303_vm1, %v273_v15  ;;  %2281 = vmatprep.mubr.msk.f32.mxu0 %vm303_vm1, %v275_v19 }
  0x37   : > { %2230 = vmatmul.mubr.msk.f32.gmra.mxu1 %vm303_vm1, %v274_v18  ;;  %2282 = vmatmul.mubr.msk.f32.gmra.mxu0 %vm303_vm1, %v276_v22 }
  0x38   : > { %2232 = vmatprep.mubr.msk.f32.mxu1 %vm303_vm1, %v275_v19  ;;  %2284 = vmatprep.mubr.msk.f32.mxu0 %vm303_vm1, %v277_v23 }
  0x3b   : > { %2233 = vmatmul.mubr.msk.f32.gmra.mxu1 %vm303_vm1, %v276_v22  ;;  %2285 = vmatmul.mubr.msk.f32.gmra.mxu0 %vm303_vm1, %v278_v26 }
  0x3c   : > { %2235 = vmatprep.mubr.msk.f32.mxu1 %vm303_vm1, %v277_v23  ;;  %2287 = vmatprep.mubr.msk.f32.mxu0 %vm303_vm1, %v279_v27 }
  0x3f   : > { %2236 = vmatmul.mubr.msk.f32.gmra.mxu1 %vm303_vm1, %v278_v26  ;;  %2288 = vmatmul.mubr.msk.f32.gmra.mxu0 %vm303_vm1, %v280_v30 }
  0x40   : > { %2238 = vmatprep.mubr.msk.f32.mxu1 %vm303_vm1, %v279_v27  ;;  %2290 = vmatprep.mubr.msk.f32.mxu0 %vm303_vm1, %v281_v31 }
  0x43   : > { %2239 = vmatmul.mubr.msk.f32.gmra.mxu1 %vm303_vm1, %v280_v30  ;;  %2291 = vmatmul.mubr.msk.f32.gmra.mxu0 %vm303_vm1, %v282_v34 }
  0x44   : > { %2241 = vmatprep.mubr.msk.f32.mxu1 %vm303_vm1, %v281_v31  ;;  %2293 = vmatprep.mubr.msk.f32.mxu0 %vm303_vm1, %v283_v35 }
  0x47   : > { %2242 = vmatmul.mubr.msk.f32.gmra.mxu1 %vm303_vm1, %v282_v34  ;;  %2294 = vmatmul.mubr.msk.f32.gmra.mxu0 %vm303_vm1, %v284_v37 }
  0x48   : > { %2244 = vmatprep.mubr.msk.f32.mxu1 %vm303_vm1, %v283_v35  ;;  %2296 = vmatprep.mubr.msk.f32.mxu0 %vm303_vm1, %v2444_v4 }
  0x4b   : > { %2245 = vmatmul.mubr.msk.f32.gmra.mxu1 %vm303_vm1, %v284_v37  ;;  %2297 = vmatmul.mubr.msk.f32.gmra.mxu0 %vm303_vm1, %v2447_v5 }
  0x4c   : > { %2247 = vmatprep.mubr.msk.f32.mxu1 %vm303_vm1, %v2444_v4  ;;  %2299 = vmatprep.mubr.msk.f32.mxu0 %vm303_vm1, %v2450_v6 }
  0x4f   : > { %2248 = vmatmul.mubr.msk.f32.gmra.mxu1 %vm303_vm1, %v2447_v5  ;;  %2300 = vmatmul.mubr.msk.f32.gmra.mxu0 %vm303_vm1, %v2467_v11 }
  0x50   : > { %2250 = vmatprep.mubr.msk.f32.mxu1 %vm303_vm1, %v2450_v6  ;;  %2302 = vmatprep.mubr.msk.f32.mxu0 %vm303_vm1, %v2473_v13 }
  0x53   : > { %2251 = vmatmul.mubr.msk.f32.gmra.mxu1 %vm303_vm1, %v2467_v11  ;;  %2303 = vmatmul.mubr.msk.f32.gmra.mxu0 %vm303_vm1, %v2485_v16 }
  0x54   : > { %2253 = vmatprep.mubr.msk.f32.mxu1 %vm303_vm1, %v2473_v13  ;;  %2305 = vmatprep.mubr.msk.f32.mxu0 %vm303_vm1, %v2488_v17 }
  0x57   : > { %2254 = vmatmul.mubr.msk.f32.gmra.mxu1 %vm303_vm1, %v2485_v16  ;;  %2306 = vmatmul.mubr.msk.f32.gmra.mxu0 %vm303_vm1, %v2499_v20 }
  0x58   : > { %2256 = vmatprep.mubr.msk.f32.mxu1 %vm303_vm1, %v2488_v17  ;;  %2308 = vmatprep.mubr.msk.f32.mxu0 %vm303_vm1, %v2502_v21 }
  0x5b   : > { %2257 = vmatmul.mubr.msk.f32.gmra.mxu1 %vm303_vm1, %v2499_v20  ;;  %2309 = vmatmul.mubr.msk.f32.gmra.mxu0 %vm303_vm1, %v2513_v24 }
  0x5c   : > { %2259 = vmatprep.mubr.msk.f32.mxu1 %vm303_vm1, %v2502_v21  ;;  %2311 = vmatprep.mubr.msk.f32.mxu0 %vm303_vm1, %v2516_v25 }
  0x5f   : > { %2260 = vmatmul.mubr.msk.f32.gmra.mxu1 %vm303_vm1, %v2513_v24  ;;  %2312 = vmatmul.mubr.msk.f32.gmra.mxu0 %vm303_vm1, %v2527_v28 }
  0x60   : > { %2262 = vmatprep.mubr.msk.f32.mxu1 %vm303_vm1, %v2516_v25  ;;  %2314 = vmatprep.mubr.msk.f32.mxu0 %vm303_vm1, %v2530_v29 }
  0x63   : > { %2263 = vmatmul.mubr.msk.f32.gmra.mxu1 %vm303_vm1, %v2527_v28  ;;  %2315 = vmatmul.mubr.msk.f32.gmra.mxu0 %vm303_vm1, %v2541_v32 }
  0x64   : > { %2265 = vmatprep.mubr.msk.f32.mxu1 %vm303_vm1, %v2530_v29  ;;  %2317 = vmatprep.mubr.msk.f32.mxu0 %vm303_vm1, %v2544_v33 }
  0x67   : > { %2266 = vmatmul.mubr.msk.f32.gmra.mxu1 %vm303_vm1, %v2541_v32  ;;  %2318 = vmatmul.mubr.msk.f32.gmra.mxu0 %vm303_vm1, %v2555_v36 }
  0x68   : > { %2268 = vmatprep.mubr.msk.f32.mxu1 %vm303_vm1, %v2544_v33  ;;  %2320 = vmatprep.mubr.msk.f32.mxu0 %vm303_vm1, %v1961_v38 }
  0x6b   : > { %2269 = vmatmul.mubr.msk.f32.gmra.mxu1 %vm303_vm1, %v2555_v36  ;;  %2321 = vmatmul.mubr.msk.f32.gmra.mxu0 %vm303_vm1, %v1962_v39 }
  0x6c   : > { %2271 = vmatprep.mubr.msk.f32.mxu1 %vm303_vm1, %v1961_v38  ;;  %2323 = vmatprep.mubr.msk.f32.mxu0 %vm303_vm1, %v2028_v40 }
  0x6f   : > { %2272 = vmatmul.mubr.msk.f32.gmra.mxu1 %vm303_vm1, %v1962_v39  ;;  %2324 = vmatmul.mubr.msk.f32.gmra.mxu0 %vm303_vm1, %v2029_v41 }
  0xd3   : > { %v2663_v42 = vpop.f32.mrf.mxu1  ;;  %v2176_v44 = vpop.f32.mrf.mxu0 }
  0xd5   : > { %v2665_v43 = vpop.f32.mrf.mxu1  ;;  %v470_v46 = vpop.f32.mrf.mxu0 }
  0xd7   : > { %v2667_v45 = vpop.f32.mrf.mxu1  ;;  %v2179_v48 = vpop.f32.mrf.mxu0 }
  0xd9   : > { %v2669_v47 = vpop.f32.mrf.mxu1  ;;  %v480_v50 = vpop.f32.mrf.mxu0 }
  0xdb   : > { %v2671_v49 = vpop.f32.mrf.mxu1  ;;  %v2182_v52 = vpop.f32.mrf.mxu0 }
  0xdd   : > { %v2673_v51 = vpop.f32.mrf.mxu1  ;;  %v490_v54 = vpop.f32.mrf.mxu0 }
  0xdf   : > { %v2675_v53 = vpop.f32.mrf.mxu1  ;;  %v2185_v56 = vpop.f32.mrf.mxu0 }
  0xe1   : > { %v2677_v55 = vpop.f32.mrf.mxu1  ;;  %v500_v58 = vpop.f32.mrf.mxu0 }
  0xe3   : > { %v2679_v57 = vpop.f32.mrf.mxu1  ;;  %v2683_v60 = vpop.f32.mrf.mxu0 }
  0xe5   : > { %v2681_v59 = vpop.f32.mrf.mxu1  ;;  %v2687_v62 = vpop.f32.mrf.mxu0 }
  0xe7   : > { %v2685_v61 = vpop.f32.mrf.mxu1  ;;  %v2691_v0 = vpop.f32.mrf.mxu0 }
  0xe9   : > { %v2689_v63 = vpop.f32.mrf.mxu1  ;;  %v2695_v2 = vpop.f32.mrf.mxu0 }
  0xeb   : > { %v2693_v1 = vpop.f32.mrf.mxu1  ;;  %v2699_v4 = vpop.f32.mrf.mxu0 }
  0xed   : > { %v2697_v3 = vpop.f32.mrf.mxu1  ;;  %v2703_v6 = vpop.f32.mrf.mxu0 }
  0xef   : > { %v2701_v5 = vpop.f32.mrf.mxu1  ;;  %v2707_v8 = vpop.f32.mrf.mxu0 }
  0xf1   : > { %v2705_v7 = vpop.f32.mrf.mxu1  ;;  %v2710_v10 = vpop.f32.mrf.mxu0 }
  0xf3   : > { %v2228_v9 = vpop.f32.mrf.mxu1  ;;  %v2280_v13 = vpop.f32.mrf.mxu0 }
  0xf4   : > { %v1054_v11 = vadd.f32 %v2228_v9, %v2176_v44 }
  0xf5   : > { %v862_v12 = vpop.f32.mrf.mxu1  ;;  %v1318_v17 = vpop.f32.mrf.mxu0 }
  0xf6   : > { %v1053_v14 = vadd.f32 %v862_v12, %v470_v46  ;;  %v1510_v15 = vadd.f32 %v2280_v13, %v1054_v11 }
  0xf7   : > { %v2231_v16 = vpop.f32.mrf.mxu1  ;;  %v2283_v21 = vpop.f32.mrf.mxu0 }
  0xf8   : > { %v1056_v18 = vadd.f32 %v2231_v16, %v2179_v48  ;;  %1542 = vst [vmem:[%s2715_s8 + $0x8] sm:$0xff] %v1510_v15  ;;  %v1509_v19 = vadd.f32 %v1318_v17, %v1053_v14  ;;  %v1644_v26 = vmul.f32 %v1510_v15, %v1510_v15 }
  0xf9   : > { %v872_v20 = vpop.f32.mrf.mxu1  ;;  %v1328_v27 = vpop.f32.mrf.mxu0 }
  0xfa   : > { %v1055_v22 = vadd.f32 %v872_v20, %v480_v50  ;;  %1541 = vst [vmem:[%s2715_s8] sm:$0xff] %v1509_v19  ;;  %v1643_v23 = vmul.f32 %v1509_v19, %v1509_v19  ;;  %v1512_v24 = vadd.f32 %v2283_v21, %v1056_v18  ;;  %v1605_v29 = vadd.f32 %v1510_v15, %v1509_v19 }
  0xfb   : > { %v2234_v25 = vpop.f32.mrf.mxu1  ;;  %v2286_v33 = vpop.f32.mrf.mxu0 }
  0xfc   : > { %v1058_v28 = vadd.f32 %v2234_v25, %v2182_v52  ;;  %1544 = vst [vmem:[%s2715_s8 + $0x18] sm:$0xff] %v1512_v24  ;;  %v1511_v30 = vadd.f32 %v1328_v27, %v1055_v22  ;;  %v1675_v32 = vadd.f32 %v1644_v26, %v1643_v23  ;;  %v1646_v41 = vmul.f32 %v1512_v24, %v1512_v24 }
  0xfd   : > { %v882_v31 = vpop.f32.mrf.mxu1  ;;  %v1338_v39 = vpop.f32.mrf.mxu0 }
  0xfe   : > { %v1057_v34 = vadd.f32 %v882_v31, %v490_v54  ;;  %1543 = vst [vmem:[%s2715_s8 + $0x10] sm:$0xff] %v1511_v30  ;;  %v1606_v35 = vadd.f32 %v1605_v29, %v1511_v30  ;;  %v1645_v36 = vmul.f32 %v1511_v30, %v1511_v30  ;;  %v1514_v37 = vadd.f32 %v2286_v33, %v1058_v28 }
  0xff   : > { %v2237_v38 = vpop.f32.mrf.mxu1  ;;  %v2289_v52 = vpop.f32.mrf.mxu0 }
 0x100   : > { %v1060_v40 = vadd.f32 %v2237_v38, %v2185_v56  ;;  %v1676_v44 = vadd.f32 %v1675_v32, %v1645_v36  ;;  %1546 = vst [vmem:[%s2715_s8 + $0x28] sm:$0xff] %v1514_v37  ;;  %v1513_v46 = vadd.f32 %v1338_v39, %v1057_v34  ;;  %v1607_v50 = vadd.f32 %v1606_v35, %v1512_v24 }
 0x101   : > { %v892_v48 = vpop.f32.mrf.mxu1  ;;  %v1348_v15 = vpop.f32.mrf.mxu0  ;;  %v1648_v56 = vmul.f32 %v1514_v37, %v1514_v37 }
 0x102   : > { %v1059_v9 = vadd.f32 %v892_v48, %v500_v58  ;;  %1545 = vst [vmem:[%s2715_s8 + $0x20] sm:$0xff] %v1513_v46  ;;  %v1647_v54 = vmul.f32 %v1513_v46, %v1513_v46  ;;  %v1677_v11 = vadd.f32 %v1676_v44, %v1646_v41  ;;  %v1516_v12 = vadd.f32 %v2289_v52, %v1060_v40 }
 0x103   : > { %v2240_v13 = vpop.f32.mrf.mxu1  ;;  %v1608_v14 = vadd.f32 %v1607_v50, %v1513_v46  ;;  %v2292_v21 = vpop.f32.mrf.mxu0 }
 0x104   : > { %v1062_v16 = vadd.f32 %v2240_v13, %v2683_v60  ;;  %v1678_v17 = vadd.f32 %v1677_v11, %v1647_v54  ;;  %1548 = vst [vmem:[%s2715_s8 + $0x38] sm:$0xff] %v1516_v12  ;;  %v1515_v18 = vadd.f32 %v1348_v15, %v1059_v9  ;;  %v1650_v28 = vmul.f32 %v1516_v12, %v1516_v12 }
 0x105   : > { %v902_v19 = vpop.f32.mrf.mxu1  ;;  %v1609_v20 = vadd.f32 %v1608_v14, %v1514_v37  ;;  %v1358_v27 = vpop.f32.mrf.mxu0 }
 0x106   : > { %v1061_v58 = vadd.f32 %v902_v19, %v2687_v62  ;;  %1547 = vst [vmem:[%s2715_s8 + $0x30] sm:$0xff] %v1515_v18  ;;  %v1649_v22 = vmul.f32 %v1515_v18, %v1515_v18  ;;  %v1679_v23 = vadd.f32 %v1678_v17, %v1648_v56  ;;  %v1518_v24 = vadd.f32 %v2292_v21, %v1062_v16 }
 0x107   : > { %v2243_v25 = vpop.f32.mrf.mxu1  ;;  %v1610_v26 = vadd.f32 %v1609_v20, %v1515_v18  ;;  %v2295_v33 = vpop.f32.mrf.mxu0 }
 0x108   : > { %v1064_v60 = vadd.f32 %v2243_v25, %v2691_v0  ;;  %v1680_v29 = vadd.f32 %v1679_v23, %v1649_v22  ;;  %1550 = vst [vmem:[%s2715_s8 + $0x48] sm:$0xff] %v1518_v24  ;;  %v1517_v30 = vadd.f32 %v1358_v27, %v1061_v58  ;;  %v1652_v40 = vmul.f32 %v1518_v24, %v1518_v24 }
 0x109   : > { %v912_v31 = vpop.f32.mrf.mxu1  ;;  %v1611_v32 = vadd.f32 %v1610_v26, %v1516_v12  ;;  %v1368_v39 = vpop.f32.mrf.mxu0 }
 0x10a   : > { %v1063_v62 = vadd.f32 %v912_v31, %v2695_v2  ;;  %1549 = vst [vmem:[%s2715_s8 + $0x40] sm:$0xff] %v1517_v30  ;;  %v1651_v34 = vmul.f32 %v1517_v30, %v1517_v30  ;;  %v1681_v35 = vadd.f32 %v1680_v29, %v1650_v28  ;;  %v1520_v36 = vadd.f32 %v2295_v33, %v1064_v60 }
 0x10b   : > { %v2246_v37 = vpop.f32.mrf.mxu1  ;;  %v1612_v38 = vadd.f32 %v1611_v32, %v1517_v30  ;;  %v2298_v50 = vpop.f32.mrf.mxu0 }
 0x10c   : > { %v1066_v0 = vadd.f32 %v2246_v37, %v2699_v4  ;;  %v1682_v41 = vadd.f32 %v1681_v35, %v1651_v34  ;;  %1552 = vst [vmem:[%s2715_s8 + $0x58] sm:$0xff] %v1520_v36  ;;  %v1519_v44 = vadd.f32 %v1368_v39, %v1063_v62  ;;  %v1654_v14 = vmul.f32 %v1520_v36, %v1520_v36 }
 0x10d   : > { %v922_v46 = vpop.f32.mrf.mxu1  ;;  %v1613_v48 = vadd.f32 %v1612_v38, %v1518_v24  ;;  %v1378_v13 = vpop.f32.mrf.mxu0 }
 0x10e   : > { %v1065_v2 = vadd.f32 %v922_v46, %v2703_v6  ;;  %1551 = vst [vmem:[%s2715_s8 + $0x50] sm:$0xff] %v1519_v44  ;;  %v1653_v52 = vmul.f32 %v1519_v44, %v1519_v44  ;;  %v1683_v9 = vadd.f32 %v1682_v41, %v1652_v40  ;;  %v1522_v54 = vadd.f32 %v2298_v50, %v1066_v0 }
 0x10f   : > { %v2249_v11 = vpop.f32.mrf.mxu1  ;;  %v1614_v12 = vadd.f32 %v1613_v48, %v1519_v44  ;;  %v2301_v18 = vpop.f32.mrf.mxu0 }
 0x110   : > { %v1068_v4 = vadd.f32 %v2249_v11, %v2707_v8  ;;  %v1684_v15 = vadd.f32 %v1683_v9, %v1653_v52  ;;  %1554 = vst [vmem:[%s2715_s8 + $0x68] sm:$0xff] %v1522_v54  ;;  %v1521_v16 = vadd.f32 %v1378_v13, %v1065_v2  ;;  %v1656_v24 = vmul.f32 %v1522_v54, %v1522_v54 }
 0x111   : > { %v932_v56 = vpop.f32.mrf.mxu1  ;;  %v1615_v17 = vadd.f32 %v1614_v12, %v1520_v36  ;;  %v1388_v23 = vpop.f32.mrf.mxu0 }
 0x112   : > { %v1067_v6 = vadd.f32 %v932_v56, %v2710_v10  ;;  %1553 = vst [vmem:[%s2715_s8 + $0x60] sm:$0xff] %v1521_v16  ;;  %v1655_v19 = vmul.f32 %v1521_v16, %v1521_v16  ;;  %v1685_v20 = vadd.f32 %v1684_v15, %v1654_v14  ;;  %v1524_v21 = vadd.f32 %v2301_v18, %v1068_v4 }
 0x113   : > { %v2252_v58 = vpop.f32.mrf.mxu1  ;;  %v1616_v22 = vadd.f32 %v1615_v17, %v1521_v16  ;;  %v2304_v28 = vpop.f32.mrf.mxu0 }
 0x114   : > { %v1070_v8 = vadd.f32 %v2252_v58, %v2663_v42  ;;  %v1686_v25 = vadd.f32 %v1685_v20, %v1655_v19  ;;  %1556 = vst [vmem:[%s2715_s8 + $0x78] sm:$0xff] %v1524_v21  ;;  %v1523_v26 = vadd.f32 %v1388_v23, %v1067_v6  ;;  %v1658_v34 = vmul.f32 %v1524_v21, %v1524_v21 }
 0x115   : > { %v942_v27 = vpop.f32.mrf.mxu1  ;;  %v1617_v60 = vadd.f32 %v1616_v22, %v1522_v54  ;;  %v1398_v62 = vpop.f32.mrf.mxu0 }
 0x116   : > { %v1069_v10 = vadd.f32 %v942_v27, %v2665_v43  ;;  %1555 = vst [vmem:[%s2715_s8 + $0x70] sm:$0xff] %v1523_v26  ;;  %v1657_v29 = vmul.f32 %v1523_v26, %v1523_v26  ;;  %v1687_v30 = vadd.f32 %v1686_v25, %v1656_v24  ;;  %v1526_v31 = vadd.f32 %v2304_v28, %v1070_v8 }
 0x117   : > { %v2255_v32 = vpop.f32.mrf.mxu1  ;;  %v1618_v33 = vadd.f32 %v1617_v60, %v1523_v26  ;;  %v2307_v39 = vpop.f32.mrf.mxu0 }
 0x118   : > { %v1072_v42 = vadd.f32 %v2255_v32, %v2667_v45  ;;  %v1688_v35 = vadd.f32 %v1687_v30, %v1657_v29  ;;  %1558 = vst [vmem:[%s2715_s8 + $0x88] sm:$0xff] %v1526_v31  ;;  %v1525_v36 = vadd.f32 %v1398_v62, %v1069_v10  ;;  %v1660_v50 = vmul.f32 %v1526_v31, %v1526_v31 }
 0x119   : > { %v952_v37 = vpop.f32.mrf.mxu1  ;;  %v1619_v38 = vadd.f32 %v1618_v33, %v1524_v21  ;;  %v1408_v48 = vpop.f32.mrf.mxu0 }
 0x11a   : > { %v1071_v43 = vadd.f32 %v952_v37, %v2669_v47  ;;  %1557 = vst [vmem:[%s2715_s8 + $0x80] sm:$0xff] %v1525_v36  ;;  %v1659_v0 = vmul.f32 %v1525_v36, %v1525_v36  ;;  %v1689_v40 = vadd.f32 %v1688_v35, %v1658_v34  ;;  %v1528_v41 = vadd.f32 %v2307_v39, %v1072_v42 }
 0x11b   : > { %v2258_v44 = vpop.f32.mrf.mxu1  ;;  %v1620_v46 = vadd.f32 %v1619_v38, %v1525_v36  ;;  %v2310_v11 = vpop.f32.mrf.mxu0 }
 0x11c   : > { %v1074_v45 = vadd.f32 %v2258_v44, %v2671_v49  ;;  %v1690_v2 = vadd.f32 %v1689_v40, %v1659_v0  ;;  %1560 = vst [vmem:[%s2715_s8 + $0x98] sm:$0xff] %v1528_v41  ;;  %v1527_v52 = vadd.f32 %v1408_v48, %v1071_v43  ;;  %v1662_v56 = vmul.f32 %v1528_v41, %v1528_v41 }
 0x11d   : > { %v962_v9 = vpop.f32.mrf.mxu1  ;;  %v1621_v54 = vadd.f32 %v1620_v46, %v1526_v31  ;;  %v1418_v16 = vpop.f32.mrf.mxu0 }
 0x11e   : > { %v1073_v47 = vadd.f32 %v962_v9, %v2673_v51  ;;  %1559 = vst [vmem:[%s2715_s8 + $0x90] sm:$0xff] %v1527_v52  ;;  %v1661_v12 = vmul.f32 %v1527_v52, %v1527_v52  ;;  %v1691_v13 = vadd.f32 %v1690_v2, %v1660_v50  ;;  %v1530_v4 = vadd.f32 %v2310_v11, %v1074_v45 }
 0x11f   : > { %v2261_v14 = vpop.f32.mrf.mxu1  ;;  %v1622_v15 = vadd.f32 %v1621_v54, %v1527_v52  ;;  %v2313_v20 = vpop.f32.mrf.mxu0 }
 0x120   : > { %v1076_v49 = vadd.f32 %v2261_v14, %v2675_v53  ;;  %v1692_v17 = vadd.f32 %v1691_v13, %v1661_v12  ;;  %1562 = vst [vmem:[%s2715_s8 + $0xa8] sm:$0xff] %v1530_v4  ;;  %v1529_v18 = vadd.f32 %v1418_v16, %v1073_v47  ;;  %v1664_v25 = vmul.f32 %v1530_v4, %v1530_v4 }
 0x121   : > { %v972_v6 = vpop.f32.mrf.mxu1  ;;  %v1623_v19 = vadd.f32 %v1622_v15, %v1528_v41  ;;  %v1428_v24 = vpop.f32.mrf.mxu0 }
 0x122   : > { %v1075_v51 = vadd.f32 %v972_v6, %v2677_v55  ;;  %1561 = vst [vmem:[%s2715_s8 + $0xa0] sm:$0xff] %v1529_v18  ;;  %v1663_v21 = vmul.f32 %v1529_v18, %v1529_v18  ;;  %v1693_v58 = vadd.f32 %v1692_v17, %v1662_v56  ;;  %v1532_v22 = vadd.f32 %v2313_v20, %v1076_v49 }
 0x123   : > { %v2264_v23 = vpop.f32.mrf.mxu1  ;;  %v1624_v8 = vadd.f32 %v1623_v19, %v1529_v18  ;;  %v2316_v10 = vpop.f32.mrf.mxu0 }
 0x124   : > { %v1078_v53 = vadd.f32 %v2264_v23, %v2679_v57  ;;  %v1694_v26 = vadd.f32 %v1693_v58, %v1663_v21  ;;  %1564 = vst [vmem:[%s2715_s8 + $0xb8] sm:$0xff] %v1532_v22  ;;  %v1531_v27 = vadd.f32 %v1428_v24, %v1075_v51  ;;  %v1666_v42 = vmul.f32 %v1532_v22, %v1532_v22 }
 0x125   : > { %v982_v60 = vpop.f32.mrf.mxu1  ;;  %v1625_v28 = vadd.f32 %v1624_v8, %v1530_v4  ;;  %v1438_v62 = vpop.f32.mrf.mxu0 }
 0x126   : > { %v1077_v55 = vadd.f32 %v982_v60, %v2681_v59  ;;  %1563 = vst [vmem:[%s2715_s8 + $0xb0] sm:$0xff] %v1531_v27  ;;  %v1665_v29 = vmul.f32 %v1531_v27, %v1531_v27  ;;  %v1695_v30 = vadd.f32 %v1694_v26, %v1664_v25  ;;  %v1534_v31 = vadd.f32 %v2316_v10, %v1078_v53 }
 0x127   : > { %v2267_v32 = vpop.f32.mrf.mxu1  ;;  %v1626_v33 = vadd.f32 %v1625_v28, %v1531_v27  ;;  %v2319_v38 = vpop.f32.mrf.mxu0 }
 0x128   : > { %v1080_v57 = vadd.f32 %v2267_v32, %v2685_v61  ;;  %v1696_v34 = vadd.f32 %v1695_v30, %v1665_v29  ;;  %1566 = vst [vmem:[%s2715_s8 + $0xc8] sm:$0xff] %v1534_v31  ;;  %v1533_v35 = vadd.f32 %v1438_v62, %v1077_v55  ;;  %v1668_v46 = vmul.f32 %v1534_v31, %v1534_v31 }
 0x129   : > { %v992_v36 = vpop.f32.mrf.mxu1  ;;  %v1627_v37 = vadd.f32 %v1626_v33, %v1532_v22  ;;  %v1448_v44 = vpop.f32.mrf.mxu0 }
 0x12a   : > { %v1079_v59 = vadd.f32 %v992_v36, %v2689_v63  ;;  %1565 = vst [vmem:[%s2715_s8 + $0xc0] sm:$0xff] %v1533_v35  ;;  %v1667_v39 = vmul.f32 %v1533_v35, %v1533_v35  ;;  %v1697_v43 = vadd.f32 %v1696_v34, %v1666_v42  ;;  %v1536_v0 = vadd.f32 %v2319_v38, %v1080_v57 }
 0x12b   : > { %v2270_v40 = vpop.f32.mrf.mxu1  ;;  %v1628_v41 = vadd.f32 %v1627_v37, %v1533_v35  ;;  %v2322_v52 = vpop.f32.mrf.mxu0 }
 0x12c   : > { %v1082_v61 = vadd.f32 %v2270_v40, %v2693_v1  ;;  %v1698_v48 = vadd.f32 %v1697_v43, %v1667_v39  ;;  %1568 = vst [vmem:[%s2715_s8 + $0xd8] sm:$0xff] %v1536_v0  ;;  %v1535_v45 = vadd.f32 %v1448_v44, %v1079_v59  ;;  %v1670_v4 = vmul.f32 %v1536_v0, %v1536_v0 }
 0x12d   : > { %v1002_v50 = vpop.f32.mrf.mxu1  ;;  %v1629_v2 = vadd.f32 %v1628_v41, %v1534_v31  ;;  %v1458_v13 = vpop.f32.mrf.mxu0 }
 0x12e   : > { %v1081_v63 = vadd.f32 %v1002_v50, %v2697_v3  ;;  %1567 = vst [vmem:[%s2715_s8 + $0xd0] sm:$0xff] %v1535_v45  ;;  %v1669_v9 = vmul.f32 %v1535_v45, %v1535_v45  ;;  %v1699_v54 = vadd.f32 %v1698_v48, %v1668_v46  ;;  %v1538_v11 = vadd.f32 %v2322_v52, %v1082_v61 }
 0x12f   : > { %v2273_v47 = vpop.f32.mrf.mxu1  ;;  %v1630_v12 = vadd.f32 %v1629_v2, %v1535_v45  ;;  %v2325_v56 = vpop.f32.mrf.mxu0 }
 0x130   : > { %v1084_v1 = vadd.f32 %v2273_v47, %v2701_v5  ;;  %v1700_v14 = vadd.f32 %v1699_v54, %v1669_v9  ;;  %1570 = vst [vmem:[%s2715_s8 + $0xe8] sm:$0xff] %v1538_v11  ;;  %v1537_v15 = vadd.f32 %v1458_v13, %v1081_v63  ;;  %v1672_v51 = vmul.f32 %v1538_v11, %v1538_v11 }
 0x131   : > { %v1012_v16 = vpop.f32.mrf.mxu1  ;;  %v1631_v49 = vadd.f32 %v1630_v12, %v1536_v0  ;;  %v1468_v20 = vpop.f32.mrf.mxu0 }
 0x132   : > { %v1083_v3 = vadd.f32 %v1012_v16, %v2705_v7  ;;  %1569 = vst [vmem:[%s2715_s8 + $0xe0] sm:$0xff] %v1537_v15  ;;  %v1671_v17 = vmul.f32 %v1537_v15, %v1537_v15  ;;  %v1701_v18 = vadd.f32 %v1700_v14, %v1670_v4  ;;  %v1540_v6 = vadd.f32 %v2325_v56, %v1084_v1 }
 0x133   : > { %v1632_v19 = vadd.f32 %v1631_v49, %v1537_v15 }
 0x134   : > { %v1702_v21 = vadd.f32 %v1701_v18, %v1671_v17  ;;  %1572 = vst [vmem:[%s2715_s8 + $0xf8] sm:$0xff] %v1540_v6  ;;  %v1539_v5 = vadd.f32 %v1468_v20, %v1083_v3  ;;  %v1674_v24 = vmul.f32 %v1540_v6, %v1540_v6 }
 0x135   : > { %v1633_v58 = vadd.f32 %v1632_v19, %v1538_v11 }
 0x136   : > { %1571 = vst [vmem:[%s2715_s8 + $0xf0] sm:$0xff] %v1539_v5  ;;  %v1673_v22 = vmul.f32 %v1539_v5, %v1539_v5  ;;  %v1703_v23 = vadd.f32 %v1702_v21, %v1672_v51 }
 0x137   : > { %v1634_v8 = vadd.f32 %v1633_v58, %v1539_v5 }
 0x138   : > { %v1704_v53 = vadd.f32 %v1703_v23, %v1673_v22 }
 0x139   : > { %v1635_v25 = vadd.f32 %v1634_v8, %v1540_v6 }
 0x13a   : > { %v1705_v7 = vadd.f32 %v1704_v53, %v1674_v24 }
 0x13b   : > { %v1636_v26 = vrot.slane %v1635_v25, 4 }
 0x13c   : > { %v1706_v27 = vrot.slane %v1705_v7, 4 }
 0x13d   : > { %v1637_v60 = vadd.f32 %v1636_v26, %v1635_v25 }
 0x13e   : > { %v1707_v28 = vadd.f32 %v1706_v27, %v1705_v7 }
 0x13f   : > { %v1638_v10 = vrot.slane %v1637_v60, 2 }
 0x140   : > { %v1708_v55 = vrot.slane %v1707_v28, 2 }
 0x141   : > { %v1639_v29 = vadd.f32 %v1638_v10, %v1637_v60 }
 0x142   : > { %v1709_v30 = vadd.f32 %v1708_v55, %v1707_v28 }
 0x143   : > { %v1640_v31 = vrot.slane %v1639_v29, 1 }
 0x144   : > { %v1710_v32 = vrot.slane %v1709_v30, 1 }
 0x145   : > { %v1641_v33 = vadd.f32 %v1640_v31, %v1639_v29 }
 0x146   : > { %v1711_v62 = vadd.f32 %v1710_v32, %v1709_v30 }
 0x147   : > { %1642 = vst [vmem:[%s268_s16] sm:$0x1] %v1641_v33 }
 0x148   : > { %1712 = vst [vmem:[%s268_s16 + $0x1] sm:$0x1] %v1711_v62 }
 0x149 PF: > { %s14_s14 = sadd.s32 1, %s2377_s14   ;;  %s2790_s12 = smov %s2373_s13 }
 0x14a   : > { %p11_p5 = scmp.ge.s32.totalorder %s14_s14, 4   ;;  %s2791_s13 = smov %s2793_s15 }
 0x14c   :  { %13 = sbr.rel (!%p11_p5) target bundleno = 2 (0x2), region = 77 }

</bundles_post_ra>
